<compile_context>
chip_gen: v6e
topology: v6e:2x2x1
jax: 0.10.0
libtpu: 0.0.40
codegen_flags: <defaults>
</compile_context>

<pallas_src>
import math

import jax
import jax.numpy as jnp
from jax.experimental import pallas as pl
from jax.experimental.pallas import tpu as pltpu


# --------------- Pallas kernel: fused low-rank frame transform ---------------
def _lowrank_frame_kernel(x_ref, at_ref, b_ref, o_ref, z_ref):
    # x_ref : (tm, nfft)  bf16 frame tile
    # at_ref: (nfft, R)   bf16 masked/windowed analysis rows, transposed (resident)
    # b_ref : (R, nfft)   bf16 windowed synthesis rows (resident)
    # o_ref : (tm, nfft)  f32 lane-dense output slab
    # z_ref : (tm, R)     bf16 VMEM scratch for the spectral intermediate
    z_ref[...] = jnp.dot(x_ref[...], at_ref[...],
                         preferred_element_type=jnp.float32).astype(jnp.bfloat16)
    o_ref[...] = jnp.dot(z_ref[...], b_ref[...],
                         preferred_element_type=jnp.float32).astype(o_ref.dtype)


def pallas_frame_transform(x, a_t, b, *, tm):
    """Y = (x @ a_t) @ b with both weights VMEM-resident; 1-D grid over rows."""
    P, K = x.shape
    K2, R = a_t.shape
    R2, N = b.shape
    assert K == K2 and R == R2
    grid = (pl.cdiv(P, tm),)
    return pl.pallas_call(
        _lowrank_frame_kernel,
        out_shape=jax.ShapeDtypeStruct((P, N), jnp.float32),
        grid_spec=pltpu.PrefetchScalarGridSpec(
            num_scalar_prefetch=0,
            grid=grid,
            in_specs=[
                pl.BlockSpec((tm, K), lambda i: (i, 0)),
                # constant index_map + single-buffered: loaded once, one VMEM copy
                pl.BlockSpec((K, R), lambda i: (0, 0), pipeline_mode=pl.Buffered(1)),
                pl.BlockSpec((R, N), lambda i: (0, 0), pipeline_mode=pl.Buffered(1)),
            ],
            out_specs=pl.BlockSpec((tm, N), lambda i: (i, 0)),
            scratch_shapes=[pltpu.VMEM((tm, R), jnp.bfloat16)],
        ),
        compiler_params=pltpu.CompilerParams(
            dimension_semantics=("parallel",),
            vmem_limit_bytes=32 * 1024 * 1024,
        ),
        cost_estimate=pl.CostEstimate(
            flops=2 * P * K * R + 2 * P * R * N,
            transcendentals=0,
            bytes_accessed=2 * (P * K + K * R + R * N) + 4 * P * N,
        ),
    )(x, a_t, b)


def _choose_tm(P, cap=1024):
    """Row tile: multiple of 16 (bf16 sublane packing), rounded to the 256 MXU
    granule when large, capped, and sized so the grid has >= 2 steps (keeps
    both v7x TensorCores busy via the "parallel" grid axis)."""
    if P <= 16:
        return 16
    if P >= 2 * cap:
        return cap
    tm = -(-P // 2)                      # ceil(P/2): at least two grid steps
    if tm >= 256:
        tm = -(-tm // 256) * 256         # MXU M-granule (v6e/v7x 2x256^2)
        # TODO(synk): round to 128 instead when targeting v5e (4x128^2 MXU).
    else:
        tm = -(-tm // 16) * 16
    return min(tm, cap)


# --------------------------- STFTDecimate in JAX ----------------------------
class STFTDecimate:
    def __init__(self, r, nfft=1024, hop=256):
        assert nfft % hop == 0
        self.r = r
        self.nfft = nfft
        self.hop = hop

        # periodic Hann window (torch.hann_window default periodic=True)
        n = jnp.arange(nfft, dtype=jnp.float32)
        win = 0.5 * (1.0 - jnp.cos(2.0 * math.pi * n / nfft))
        self.window = win

        # brick-wall one-sided filter (matches torch: f[0, int(nbins * 1/r):] = 0)
        nbins = nfft // 2 + 1
        cutoff = int(nbins * (1.0 / r))              # kept bins: 0 .. cutoff-1
        mask = jnp.ones((nbins,), jnp.float32).at[cutoff:].set(0.0)
        self.filters = mask[None, :]

        # Low-rank factorization of win*irfft(mask*rfft(win*frame)) over kept bins:
        #   v[n] = sum_k scale_k [ (sum_m u_m cos(2pi*k*m/N)) cos(2pi*k*n/N)
        #                        + (sum_m u_m sin(2pi*k*m/N)) sin(2pi*k*n/N) ]
        # with u = win*frame, scale_0 = 1/N, scale_k = 2/N (1/N at Nyquist if kept).
        # Windows folded into both matrices, so the kernel runs Y = (X @ A^T) @ B.
        k = jnp.arange(cutoff, dtype=jnp.float32)
        ang = 2.0 * math.pi * k[:, None] * n[None, :] / nfft         # (cutoff, nfft)
        cosm, sinm = jnp.cos(ang), jnp.sin(ang)
        scale = jnp.where((k == 0) | (k == nfft // 2), 1.0, 2.0)[:, None] / nfft
        A = jnp.concatenate([scale * cosm, scale * sinm], axis=0) * win[None, :]
        S = jnp.concatenate([cosm, sinm], axis=0) * win[None, :]
        rank = 2 * cutoff
        rank_pad = max(128, -(-rank // 128) * 128)   # lane-align; zero rows are inert
        A = jnp.pad(A, ((0, rank_pad - rank), (0, 0)))
        S = jnp.pad(S, ((0, rank_pad - rank), (0, 0)))
        # bf16 MXU operands (f32 accumulation happens inside the kernel)
        self.At = A.T.astype(jnp.bfloat16)           # (nfft, rank_pad) analysis
        self.B = S.astype(jnp.bfloat16)              # (rank_pad, nfft) synthesis
        self.rank = rank_pad
        # TODO(synk): restrict B's columns to the nfft/r samples that survive the
        # final ::r decimation and run OLA/env on the decimated grid (needs a
        # reworked OLA indexing + numerical regression test against this path).

    def __call__(self, x):
        nfft, hop = self.nfft, self.hop
        origin_shape = x.shape
        T = origin_shape[-1]

        xf = x.reshape(-1, T).astype(jnp.float32)             # x.view(-1, T)
        Bf = xf.shape[0]

        # F.pad(x, (0, nfft)) then torch.stft center=True -> reflect pad nfft//2
        xf = jnp.pad(xf, ((0, 0), (0, nfft)))
        xp = jnp.pad(xf, ((0, 0), (nfft // 2, nfft // 2)), mode="reflect")
        xp = xp.astype(jnp.bfloat16)                          # bf16 MXU operand

        s = nfft // hop
        n_frames = 1 + (T + nfft) // hop

        # framing without gather: hop-sized blocks + s shifted static slices
        # TODO(synk): build frames inside the kernel from a per-tile signal strip
        # to remove the s-fold duplication of X in HBM (v6e HBM-read lever).
        nb = n_frames + s - 1                                  # blocks needed
        blocks = xp[:, :nb * hop].reshape(Bf, nb, hop)
        frames = jnp.concatenate(
            [blocks[:, j:j + n_frames, :] for j in range(s)], axis=-1
        )                                                      # (Bf, n_frames, nfft) bf16

        P = Bf * n_frames
        X = frames.reshape(P, nfft)

        # hot path: per-frame win*irfft(mask*rfft(win*frame)) == (X @ A^T) @ B
        tm = _choose_tm(P)
        Y = pallas_frame_transform(X, self.At, self.B, tm=tm)  # (P, nfft) f32
        Y = Y.reshape(Bf, n_frames, nfft)

        # overlap-add + window-squared envelope (istft)
        Yb = Y.reshape(Bf, n_frames, s, hop)
        w2 = (self.window * self.window).reshape(s, hop)
        ola = jnp.zeros((Bf, n_frames + s - 1, hop), jnp.float32)
        env = jnp.zeros((n_frames + s - 1, hop), jnp.float32)
        for j in range(s):
            ola = ola.at[:, j:j + n_frames, :].add(Yb[:, :, j, :])
            env = env.at[j:j + n_frames, :].add(w2[j])
        ola = ola.reshape(Bf, -1)
        env = env.reshape(-1)

        # istft: trim center padding, normalize by window envelope
        out_len = hop * (n_frames - 1)
        start = nfft // 2
        y = ola[:, start:start + out_len] / env[start:start + out_len]

        y = y[:, :T]                                           # x[:, :T]
        y = y.reshape(origin_shape)                            # x.view(*origin_shape)
        return y[..., ::self.r]                                # decimate


if __name__ == "__main__":
    key = jax.random.PRNGKey(0)
    # small example: batch=2, channels=3, T=1024 samples, decimation r=2
    x = jax.random.normal(key, (2, 3, 1024), dtype=jnp.float32)

    model = STFTDecimate(r=2)
    out = model(x)
    out = jax.block_until_ready(out)

    assert out.shape == (2, 3, 512), out.shape
    assert jnp.all(jnp.isfinite(out))
    print("KERNEL_OK")
</pallas_src>

<mosaic_0001>
module attributes {stable_mosaic.version = 11 : i64} {
  func.func @_lowrank_frame_kernel(%arg0: i32, %arg1: memref<32x1024xbf16, #tpu.memory_space<vmem>>, %arg2: memref<1024x512xbf16, #tpu.memory_space<vmem>>, %arg3: memref<512x1024xbf16, #tpu.memory_space<vmem>>, %arg4: memref<32x1024xf32, #tpu.memory_space<vmem>>, %arg5: memref<32x512xbf16, #tpu.memory_space<vmem>>) attributes {dimension_semantics = [#tpu.dimension_semantics<parallel>], iteration_bounds = array<i64: 2>, scalar_prefetch = 0 : i64, scratch_operands = 1 : i64, tpu.core_type = #tpu.core_type<tc>, window_params = [{transform_indices = @transform_0, window_bounds = array<i64: 32, 1024>}, {pipeline_mode = #tpu.pipeline_mode<synchronous>, transform_indices = @transform_1, window_bounds = array<i64: 1024, 512>}, {pipeline_mode = #tpu.pipeline_mode<synchronous>, transform_indices = @transform_2, window_bounds = array<i64: 512, 1024>}, {transform_indices = @transform_3, window_bounds = array<i64: 32, 1024>}]} {
    %c0 = arith.constant 0 : index
    %c0_0 = arith.constant 0 : index
    %0 = vector.load %arg1[%c0, %c0_0] : memref<32x1024xbf16, #tpu.memory_space<vmem>>, vector<32x1024xbf16>
    %c0_1 = arith.constant 0 : index
    %c0_2 = arith.constant 0 : index
    %1 = vector.load %arg2[%c0_1, %c0_2] : memref<1024x512xbf16, #tpu.memory_space<vmem>>, vector<1024x512xbf16>
    %cst = arith.constant dense<0.000000e+00> : vector<32x512xf32>
    %2 = tpu.matmul %0, %1, %cst {dimension_numbers = #tpu.dot_dimension_numbers<[1], [0], [0], [1], [0, 0, 1, 1], [], []>} : vector<32x1024xbf16>, vector<1024x512xbf16>, vector<32x512xf32> -> vector<32x512xf32>
    %3 = arith.truncf %2 : vector<32x512xf32> to vector<32x512xbf16>
    %c0_3 = arith.constant 0 : index
    %c0_4 = arith.constant 0 : index
    %4 = vector.load %arg5[%c0_3, %c0_4] : memref<32x512xbf16, #tpu.memory_space<vmem>>, vector<32x512xbf16>
    tpu.vector_store %arg5[%c0_3, %c0_4], %3 {strides = array<i32>} : memref<32x512xbf16, #tpu.memory_space<vmem>>, vector<32x512xbf16>,
    %c0_5 = arith.constant 0 : index
    %c0_6 = arith.constant 0 : index
    %5 = vector.load %arg5[%c0_5, %c0_6] : memref<32x512xbf16, #tpu.memory_space<vmem>>, vector<32x512xbf16>
    %c0_7 = arith.constant 0 : index
    %c0_8 = arith.constant 0 : index
    %6 = vector.load %arg3[%c0_7, %c0_8] : memref<512x1024xbf16, #tpu.memory_space<vmem>>, vector<512x1024xbf16>
    %cst_9 = arith.constant dense<0.000000e+00> : vector<32x1024xf32>
    %7 = tpu.matmul %5, %6, %cst_9 {dimension_numbers = #tpu.dot_dimension_numbers<[1], [0], [0], [1], [0, 0, 1, 1], [], []>} : vector<32x512xbf16>, vector<512x1024xbf16>, vector<32x1024xf32> -> vector<32x1024xf32>
    %c0_10 = arith.constant 0 : index
    %c0_11 = arith.constant 0 : index
    %8 = vector.load %arg4[%c0_10, %c0_11] : memref<32x1024xf32, #tpu.memory_space<vmem>>, vector<32x1024xf32>
    tpu.vector_store %arg4[%c0_10, %c0_11], %7 {strides = array<i32>} : memref<32x1024xf32, #tpu.memory_space<vmem>>, vector<32x1024xf32>,
    return
  }
  func.func @transform_0(%arg0: i32) -> (i32, i32) {
    %c0_i32 = arith.constant 0 : i32
    %c0_i32_0 = arith.constant 0 : i32
    return %arg0, %c0_i32 : i32, i32
  }
  func.func @transform_1(%arg0: i32) -> (i32, i32) {
    %c0_i32 = arith.constant 0 : i32
    %c0_i32_0 = arith.constant 0 : i32
    %c0_i32_1 = arith.constant 0 : i32
    return %c0_i32, %c0_i32_0 : i32, i32
  }
  func.func @transform_2(%arg0: i32) -> (i32, i32) {
    %c0_i32 = arith.constant 0 : i32
    %c0_i32_0 = arith.constant 0 : i32
    %c0_i32_1 = arith.constant 0 : i32
    return %c0_i32, %c0_i32_0 : i32, i32
  }
  func.func @transform_3(%arg0: i32) -> (i32, i32) {
    %c0_i32 = arith.constant 0 : i32
    %c0_i32_0 = arith.constant 0 : i32
    return %arg0, %c0_i32 : i32, i32
  }
}

</mosaic_0001>

<bundles_post_ra>
// kernel: tpu_custom_call.1
= control target key start
LH: loop header
LB: loop body
LE: loop exit
PB: predicated region body
PF: predicated region fallthrough
CT: control target
= control target key end

     0   :  { %8 = vsyncpa [#allocation4], 0  ;;  %s6193_s0 = inlined_call_operand.hbm [shape: bf16[54,1024], index: 0, kind: input, shape index: {}]   ;;  %s6194_s1 = inlined_call_operand.hbm [shape: bf16[1024,512], index: 1, kind: input, shape index: {}]   ;;  %s6195_s2 = inlined_call_operand.hbm [shape: bf16[512,1024], index: 2, kind: input, shape index: {}]   ;;  %s6196_s3 = inlined_call_operand.hbm [shape: f32[54,1024], index: 3, kind: output, shape index: {}]  }
   0x1   :  { %10 = vsyncpa [#allocation4 + $0x1], 0 }
   0x2   :  { %11 = vsyncpa [#allocation7], 0 }
   0x3   :  { %12 = vsyncpa [#allocation5], 0 }
   0x4   :  { %14 = vsyncpa [#allocation5 + $0x1], 0  ;;  %s5732_s12 = smov 0   ;;  %s5734_s13 = smov 0  }
   0x5   :  { %s5736_s14 = smov 0   ;;  %s5738_s15 = smov 0  }
   0x6 LB: > { %s5753_s16 = sadd.s32 4294967295, %s5698_s15   ;;  %s4504_s17 = sadd.s32 4294967294, %s5698_s15   ;;  %s5698_s15 = sphi %s5738_s15, %s6213_s15   ;;  %s5694_s14 = sphi %s5736_s14, %s6212_s14   ;;  %s5690_s13 = sphi %s5734_s13, %s6211_s13   ;;  %s5686_s12 = sphi %s5732_s12, %s6210_s12  }
   0x7   : > { %s5757_s18 = sadd.s32 1, %s5698_s15   ;;  %s27_s19 = sadd.s32 1, %s5694_s14 }
   0x8   : > { %s24_s20 = ssub.s32 %s5698_s15, %s5757_s18  ;;  %p34_p0 = scmp.ne.s32.totalorder %s5694_s14, %s5690_s13 }
   0x9   : > { %p25_p1 = scmp.eq.s32.totalorder %s24_s20, 0  ;;  %p35_p2 = scmp.eq.s32.totalorder %s5698_s15, 0 }
   0xa   : > { %p40_p3 = scmp.ne.s32.totalorder %s5690_s13, %s5686_s12  ;;  %p6197_p4 = scmp.eq.s32.totalorder %s5753_s16, 0 }
   0xb   : > { %s5769_s21 = scalar_select %p25_p1, %s5694_s14, %s27_s19  }
   0xc   : > { %p5771_p5 = por %p35_p2, %p34_p0  ;;  %p5777_p6 = por %p6197_p4, %p40_p3 }
   0xd   : > { %p106_p7 = scmp.eq.s32.totalorder %s5753_s16, 1  ;;  %p112_p8 = scmp.eq.s32.totalorder %s4504_s17, 1 }
   0xe   : > { %s6200_s23 = scalar_select %p5777_p6, 1, 0 }
   0xf   : > { %p4505_p9 = scmp.ge.s32.totalorder %s5698_s15, 1  ;;  %p119_p10 = scmp.lt.s32.totalorder %s5698_s15, 3 }
  0x10   : > { %p5784_p11 = por %p106_p7, %p34_p0  ;;  %p5788_p12 = por %p112_p8, %p40_p3 }
  0x11   : > { %p5792_p13 = pnand %p4505_p9, %p119_p10  ;;  %s5700_s27 = smov [#allocation6]  }
  0x12   : > { %s6201_s24 = scalar_select %p5784_p11, 1, 0 }
  0x13   : > { %s6202_s25 = scalar_select %p5788_p12, 1, 0 }
  0x14   : > { %p5110_p1 = pneg %p5792_p13  ;;  %s131_s28 = sshll.u32 %s5700_s27, 4  ;;  %s132_s28 = int_to_ptr.vmem [resolvable:$true] %s131_s28 }
  0x15   : > { %s5701_s30 = smov [#allocation8]   ;;  %s5563_s5 = scalar_lea.vmem %s132_s28, 32768 }
  0x16   : > { %p5800_p2 = pnand %p5110_p1, %p6197_p4  ;;  %s144_s4 = sshll.u32 %s5701_s30, 4  ;;  %s145_s4 = int_to_ptr.vmem [resolvable:$true] %s144_s4 }
  0x17   : > { %p5564_p3 = scmp.ne.s32.totalorder %s132_s28, %s5563_s5  ;;  %p5571_p9 = scmp.lt.s32.totalorder %s132_s28, %s132_s28 }
  0x18   : > { %p5554_p0 = pneg %p5800_p2  ;;  %p5572_p10 = scmp.lt.s32.totalorder %s5563_s5, %s5563_s5 }
  0x1a   : > { %p5566_p7 = pnand %p5564_p3, %p5554_p0  ;;  %p5573_p12 = por %p5572_p10, %p5571_p9 }
  0x1c   : > { %p5567_p8 = pneg %p5566_p7 }
  0x1e   : > { %p5574_p1 = pnand %p5573_p12, %p5567_p8 }
  0x20   : > { %5577 = shalt.err (!%p5574_p1)
}
  0x21   : > { %s5702_s6 = smov 256   ;;  %s5703_s7 = smov 16  }
  0x22   : > { %5113 = dma.hbm_to_vmem [thread:$0]  (!%p5800_p2), %s6194_s1, 32768, %s132_s28, [#allocation7], %s5702_s6, %s5702_s6, %s5703_s7  }
  0x23   : > { %s5589_s10 = scalar_lea.vmem %s145_s4, 32768  ;;  %p5597_p11 = scmp.lt.s32.totalorder %s145_s4, %s145_s4 }
  0x24   : > { %p5590_p4 = scmp.ne.s32.totalorder %s145_s4, %s5589_s10  ;;  %p5598_p6 = scmp.lt.s32.totalorder %s5589_s10, %s5589_s10 }
  0x26   : > { %p5592_p3 = pnand %p5590_p4, %p5554_p0  ;;  %p5599_p9 = por %p5598_p6, %p5597_p11 }
  0x28   : > { %p5593_p7 = pneg %p5592_p3 }
  0x2a   : > { %p5600_p12 = pnand %p5599_p9, %p5593_p7 }
  0x2c   : > { %5603 = shalt.err (!%p5600_p12)
}
  0x2d   : > { %s5704_s11 = smov 512   ;;  %s5705_s17 = smov 32  }
  0x2e   : > { %5116 = dma.hbm_to_vmem [thread:$0]  (!%p5800_p2), %s6195_s2, 32768, %s145_s4, [#allocation7], %s5704_s11, %s5704_s11, %s5705_s17  }
  0x2f   : > { %p4508_p8 = scmp.ge.s32.totalorder %s5698_s15, 2 }
  0x31   : > { %154 = sbr.rel (%p4508_p8) target bundleno = 86 (0x56), region = 24 }
  0x36   : > { %157 = sbr.rel (!%p5771_p5) target bundleno = 86 (0x56), region = 28  ;;  %s158_s27 = sand.u32 (%p5771_p5), 1, %s5694_s14  }
  0x37   : > { %s4510_s28 = sshll.u32 (%p5771_p5), %s5698_s15, 2  ;;  %s4509_s30 = sshll.u32 (%p5771_p5), %s158_s27, 7 }
  0x38   : > { %s164_s5 = ssub.s32 (%p5771_p5), 7, %s4510_s28  ;;  %s5832_s6 = scalar_lea.sflag (%p5771_p5), [#allocation4], %s158_s27 }
  0x39   : > { %p165_p4 = scmp.lt.s32.totalorder (%p5771_p5), %s164_s5, 4  ;;  %s162_s7 = scalar_lea.vmem (%p5771_p5), [#allocation3], %s4509_s30 }
  0x3b   : > { %s6215_s5 = smov (!%p165_p4, %s164_s5), 4 }
  0x3c   : > { %s5829_s29 = sshll.u32 %s6215_s5, 9 }
  0x3d   : > { %s170_s4 = ssub.s32 2048, %s5829_s29 }
  0x3e   : > { %171 = vsyncadd %s5832_s6, %s170_s4  ;;  %p4513_p5 = scmp.ne.s32.totalorder %s5829_s29, 0  ;;  %s5080_s22 = sshll.u32 %s5698_s15, 11 }
  0x3f   : > { %s5840_s10 = scalar_lea.hbm %s6193_s0, %s5080_s22  ;;  %s177_s11 = sshll.u32 %s162_s7, 4  ;;  %s5842_s11 = int_to_ptr.vmem [resolvable:$true] %s177_s11 }
  0x40   : > { %s5604_s17 = scalar_lea.hbm %s5840_s10, %s5829_s29  ;;  %s5608_s27 = scalar_lea.hbm %s6193_s0, 3584 }
  0x41   : > { %p5605_p6 = scmp.ne.s32.totalorder %s5840_s10, %s5604_s17  ;;  %p5609_p0 = scmp.lt.s32.totalorder %s5840_s10, %s6193_s0 }
  0x42   : > { %p5610_p10 = scmp.lt.s32.totalorder %s5608_s27, %s5604_s17 }
  0x43   : > { %p5606_p11 = pnand %p5605_p6, %p4513_p5 }
  0x44   : > { %p5611_p1 = por %p5610_p10, %p5609_p0 }
  0x45   : > { %p5607_p2 = pneg %p5606_p11 }
  0x47   : > { %p5612_p3 = pnand %p5611_p1, %p5607_p2 }
  0x49   : > { %5615 = shalt.err (!%p5612_p3)
}
  0x4a   : > { %s5616_s5 = scalar_lea.vmem %s5842_s11, %s5829_s29  ;;  %s5706_s4 = smov [#allocation3]  }
  0x4b   : > { %p5617_p7 = scmp.ne.s32.totalorder %s5842_s11, %s5616_s5  ;;  %s5620_s7 = sshll.u32 %s5706_s4, 4  ;;  %s5621_s7 = int_to_ptr.vmem [resolvable:$false] %s5620_s7 }
  0x4c   : > { %s5622_s22 = scalar_lea.vmem %s5621_s7, 4096  ;;  %p5623_p4 = scmp.lt.s32.totalorder %s5842_s11, %s5621_s7 }
  0x4d   : > { %p5618_p9 = pnand %p5617_p7, %p4513_p5  ;;  %p5624_p6 = scmp.lt.s32.totalorder %s5622_s22, %s5616_s5 }
  0x4f   : > { %p5619_p12 = pneg %p5618_p9  ;;  %p5625_p11 = por %p5624_p6, %p5623_p4 }
  0x51   : > { %p5626_p0 = pnand %p5625_p11, %p5619_p12 }
  0x53   : > { %5629 = shalt.err (!%p5626_p0)
}
  0x54   : > { %s5707_s8 = smov 512   ;;  %s5708_s9 = smov 32  }
  0x55   : > { %183 = dma.hbm_to_vmem [thread:$0]  (%p4513_p5), %s5840_s10, %s5829_s29, %s5842_s11, %s5832_s6, %s5707_s8, %s5707_s8, %s5708_s9  }
  0x56 PF: > { %189 = sbr.rel (%p5792_p13) target bundleno = 988 (0x3dc), region = 32  ;;  %s5871_s17 = sand.u32 (!%p5792_p13), 1, %s5690_s13  }
  0x57   : > { %s4519_s19 = sshll.u32 (!%p5792_p13), %s5871_s17, 7  ;;  %s192_s20 = scalar_lea.sflag (!%p5792_p13), [#allocation4], %s5871_s17 }
  0x58   : > { %s5875_s27 = scalar_lea.vmem (!%p5792_p13), [#allocation3], %s4519_s19  ;;  %p6205_p2 = scmp.ne.s32.totalorder (!%p5792_p13), %s6200_s23, 0 }
  0x5b   : > { %5673 = dma.done.wait (%p6205_p2), %s192_s20, 2048  }
  0x5c   : > { %5675 = vsyncadd (%p6205_p2), %s192_s20, 4294965248  ;;  %p6206_p5 = scmp.eq.s32.totalorder %s5753_s16, 0 }
  0x5e   : > { %5677 = dma.done.wait (%p6206_p5), [#allocation7], 65536   ;;  %p6207_p13 = pmov %p6206_p5 }
  0x5f   : > { %v5168_v0 = vld [vmem:[#allocation6 + $0xe4] ss:$16 sps:$4 sm:$0xff]   ;;  %v5172_v2 = vld [vmem:[#allocation6 + $0xe0] ss:$16 sps:$4 sm:$0xff]   ;;  %v239_v50 = vld [vmem:[%s5875_s27 + $0x8] sm:$0xff]  ;;  %s4522_s23 = sshll.u32 %s5871_s17, 8 }
  0x60   : > { %5679 = vsyncadd (%p6207_p13), [#allocation7], 4294901760  ;;  %v5170_v1 = vld [vmem:[#allocation6 + $0x2e4] ss:$16 sps:$4 sm:$0xff]   ;;  %1870 = vmatprep.subr.bf16.mxu0 %v5168_v0  ;;  %v5173_v3 = vld [vmem:[#allocation6 + $0x2e0] ss:$16 sps:$4 sm:$0xff]  }
  0x61   : > { %1923 = vmatprep.subr.bf16.mxu1 %v5170_v1  ;;  %v5174_v4 = vld [vmem:[#allocation6 + $0xc4] ss:$16 sps:$4 sm:$0xff]   ;;  %1871 = vmatpush1.bf16.msra.mxu0 %v5172_v2  ;;  %v5178_v6 = vld [vmem:[#allocation6 + $0xc0] ss:$16 sps:$4 sm:$0xff]   ;;  %v243_v51 = vld [vmem:[%s5875_s27 + $0x28] sm:$0xff]  ;;  %s6096_s26 = scalar_lea.vmem [#allocation9], %s4522_s23 }
  0x62   : > { %1924 = vmatpush1.bf16.msra.mxu1 %v5173_v3  ;;  %v5176_v5 = vld [vmem:[#allocation6 + $0x2c4] ss:$16 sps:$4 sm:$0xff]   ;;  %1872 = vmatprep.subr.bf16.mxu0 %v5174_v4  ;;  %v5179_v7 = vld [vmem:[#allocation6 + $0x2c0] ss:$16 sps:$4 sm:$0xff]   ;;  %v5891_v55 = vcombine.high %v239_v50, %v243_v51  ;;  %s4391_s29 = scalar_lea.sflag [#allocation5], %s5871_s17  ;;  %p6208_p10 = scmp.ne.s32.totalorder %s6201_s24, 0 }
  0x63   : > { %1925 = vmatprep.subr.bf16.mxu1 %v5176_v5  ;;  %v5180_v8 = vld [vmem:[#allocation6 + $0xa4] ss:$16 sps:$4 sm:$0xff]   ;;  %v5184_v10 = vld [vmem:[#allocation6 + $0xa0] ss:$16 sps:$4 sm:$0xff]   ;;  %s5068_s6 = sshll.u32 (%p6208_p10), %s5753_s16, 2 }
  0x64   : > { %v5182_v9 = vld [vmem:[#allocation6 + $0x2a4] ss:$16 sps:$4 sm:$0xff]   ;;  %v5185_v11 = vld [vmem:[#allocation6 + $0x2a0] ss:$16 sps:$4 sm:$0xff]   ;;  %1955 = vmatprep.mubr.bf16.mxu1 %v5891_v55  ;;  %s4399_s10 = ssub.s32 (%p6208_p10), 7, %s5068_s6 }
  0x65   : > { %1873 = vmatpush1.bf16.msra.mxu0 %v5178_v6  ;;  %v5186_v12 = vld [vmem:[#allocation6 + $0x84] ss:$16 sps:$4 sm:$0xff]   ;;  %v5190_v14 = vld [vmem:[#allocation6 + $0x80] ss:$16 sps:$4 sm:$0xff]   ;;  %p4400_p1 = scmp.lt.s32.totalorder (%p6208_p10), %s4399_s10, 4 }
  0x66   : > { %1926 = vmatpush1.bf16.msra.mxu1 %v5179_v7  ;;  %1874 = vmatprep.subr.bf16.mxu0 %v5180_v8  ;;  %v5188_v13 = vld [vmem:[#allocation6 + $0x284] ss:$16 sps:$4 sm:$0xff]   ;;  %v5191_v15 = vld [vmem:[#allocation6 + $0x280] ss:$16 sps:$4 sm:$0xff]  }
  0x67   : > { %1927 = vmatprep.subr.bf16.mxu1 %v5182_v9  ;;  %v5192_v16 = vld [vmem:[#allocation6 + $0x64] ss:$16 sps:$4 sm:$0xff]   ;;  %v5196_v18 = vld [vmem:[#allocation6 + $0x60] ss:$16 sps:$4 sm:$0xff]   ;;  %v5897_v9 = vcombine.low %v239_v50, %v243_v51  ;;  %v5931_v50 = vld [vmem:[%s5875_s27 + $0x38] sm:$0xff] }
  0x68   : > { %v5194_v17 = vld [vmem:[#allocation6 + $0x264] ss:$16 sps:$4 sm:$0xff]   ;;  %v5197_v19 = vld [vmem:[#allocation6 + $0x260] ss:$16 sps:$4 sm:$0xff]  }
  0x69   : > { %1875 = vmatpush1.bf16.msra.mxu0 %v5184_v10  ;;  %v5198_v20 = vld [vmem:[#allocation6 + $0x44] ss:$16 sps:$4 sm:$0xff]   ;;  %v5202_v22 = vld [vmem:[#allocation6 + $0x40] ss:$16 sps:$4 sm:$0xff]  }
  0x6a   : > { %1928 = vmatpush1.bf16.msra.mxu1 %v5185_v11  ;;  %1876 = vmatprep.subr.bf16.mxu0 %v5186_v12  ;;  %v5200_v21 = vld [vmem:[#allocation6 + $0x244] ss:$16 sps:$4 sm:$0xff]   ;;  %v5203_v23 = vld [vmem:[#allocation6 + $0x240] ss:$16 sps:$4 sm:$0xff]  }
  0x6b   : > { %1929 = vmatprep.subr.bf16.mxu1 %v5188_v13  ;;  %v5204_v24 = vld [vmem:[#allocation6 + $0x24] ss:$16 sps:$4 sm:$0xff]   ;;  %v5208_v26 = vld [vmem:[#allocation6 + $0x20] ss:$16 sps:$4 sm:$0xff]  }
  0x6c   : > { %v5206_v25 = vld [vmem:[#allocation6 + $0x224] ss:$16 sps:$4 sm:$0xff]   ;;  %v5209_v27 = vld [vmem:[#allocation6 + $0x220] ss:$16 sps:$4 sm:$0xff]  }
  0x6d   : > { %1877 = vmatpush1.bf16.msra.mxu0 %v5190_v14  ;;  %v5210_v28 = vld [vmem:[#allocation6 + $0x4] ss:$16 sps:$4 sm:$0xff]   ;;  %v5214_v30 = vld [vmem:[#allocation6] ss:$16 sps:$4 sm:$0xff]  }
  0x6e   : > { %1930 = vmatpush1.bf16.msra.mxu1 %v5191_v15  ;;  %1878 = vmatprep.subr.bf16.mxu0 %v5192_v16  ;;  %v5212_v29 = vld [vmem:[#allocation6 + $0x204] ss:$16 sps:$4 sm:$0xff]   ;;  %v5215_v31 = vld [vmem:[#allocation6 + $0x200] ss:$16 sps:$4 sm:$0xff]  }
  0x6f   : > { %1931 = vmatprep.subr.bf16.mxu1 %v5194_v17  ;;  %v5216_v32 = vld [vmem:[#allocation6 + $0x1e4] ss:$16 sps:$4 sm:$0xff]   ;;  %v5220_v34 = vld [vmem:[#allocation6 + $0x1e0] ss:$16 sps:$4 sm:$0xff]  }
  0x70   : > { %v5218_v33 = vld [vmem:[#allocation6 + $0x3e4] ss:$16 sps:$4 sm:$0xff]   ;;  %v5221_v35 = vld [vmem:[#allocation6 + $0x3e0] ss:$16 sps:$4 sm:$0xff]  }
  0x71   : > { %1879 = vmatpush1.bf16.msra.mxu0 %v5196_v18  ;;  %v5222_v36 = vld [vmem:[#allocation6 + $0x1c4] ss:$16 sps:$4 sm:$0xff]   ;;  %v5226_v38 = vld [vmem:[#allocation6 + $0x1c0] ss:$16 sps:$4 sm:$0xff]  }
  0x72   : > { %1932 = vmatpush1.bf16.msra.mxu1 %v5197_v19  ;;  %1880 = vmatprep.subr.bf16.mxu0 %v5198_v20  ;;  %v5224_v37 = vld [vmem:[#allocation6 + $0x3c4] ss:$16 sps:$4 sm:$0xff]   ;;  %v5227_v39 = vld [vmem:[#allocation6 + $0x3c0] ss:$16 sps:$4 sm:$0xff]  }
  0x73   : > { %1933 = vmatprep.subr.bf16.mxu1 %v5200_v21  ;;  %v5228_v40 = vld [vmem:[#allocation6 + $0x1a4] ss:$16 sps:$4 sm:$0xff]   ;;  %v5232_v42 = vld [vmem:[#allocation6 + $0x1a0] ss:$16 sps:$4 sm:$0xff]  }
  0x74   : > { %v5230_v41 = vld [vmem:[#allocation6 + $0x3a4] ss:$16 sps:$4 sm:$0xff]   ;;  %v5233_v43 = vld [vmem:[#allocation6 + $0x3a0] ss:$16 sps:$4 sm:$0xff]  }
  0x75   : > { %1881 = vmatpush1.bf16.msra.mxu0 %v5202_v22  ;;  %v5234_v44 = vld [vmem:[#allocation6 + $0x184] ss:$16 sps:$4 sm:$0xff]   ;;  %v5238_v46 = vld [vmem:[#allocation6 + $0x180] ss:$16 sps:$4 sm:$0xff]  }
  0x76   : > { %1934 = vmatpush1.bf16.msra.mxu1 %v5203_v23  ;;  %1882 = vmatprep.subr.bf16.mxu0 %v5204_v24  ;;  %v5236_v45 = vld [vmem:[#allocation6 + $0x384] ss:$16 sps:$4 sm:$0xff]   ;;  %v5239_v47 = vld [vmem:[#allocation6 + $0x380] ss:$16 sps:$4 sm:$0xff]  }
  0x77   : > { %1935 = vmatprep.subr.bf16.mxu1 %v5206_v25  ;;  %v238_v48 = vld [vmem:[%s5875_s27] sm:$0xff] }
  0x78   : > { %v242_v49 = vld [vmem:[%s5875_s27 + $0x20] sm:$0xff] }
  0x79   : > { %1883 = vmatpush1.bf16.msra.mxu0 %v5208_v26  ;;  %v5240_v52 = vld [vmem:[#allocation6 + $0x164] ss:$16 sps:$4 sm:$0xff]   ;;  %v5889_v53 = vcombine.high %v238_v48, %v242_v49  ;;  %v5244_v56 = vld [vmem:[#allocation6 + $0x160] ss:$16 sps:$4 sm:$0xff]   ;;  %v5895_v8 = vcombine.low %v238_v48, %v242_v49  ;;  %v5924_v48 = vld [vmem:[%s5875_s27 + $0x18] sm:$0xff] }
  0x7a   : > { %1936 = vmatpush1.bf16.msra.mxu1 %v5209_v27  ;;  %1884 = vmatprep.subr.bf16.mxu0 %v5210_v28  ;;  %v5242_v54 = vld [vmem:[#allocation6 + $0x364] ss:$16 sps:$4 sm:$0xff]   ;;  %v5245_v57 = vld [vmem:[#allocation6 + $0x360] ss:$16 sps:$4 sm:$0xff]   ;;  %v5935_v51 = vcombine.high %v5924_v48, %v5931_v50 }
  0x7b   : > { %1937 = vmatprep.subr.bf16.mxu1 %v5212_v29  ;;  %1902 = vmatprep.mubr.bf16.mxu0 %v5889_v53  ;;  %v5246_v58 = vld [vmem:[#allocation6 + $0x144] ss:$16 sps:$4 sm:$0xff]   ;;  %v5250_v60 = vld [vmem:[#allocation6 + $0x140] ss:$16 sps:$4 sm:$0xff]  }
  0x7c   : > { %v5248_v59 = vld [vmem:[#allocation6 + $0x344] ss:$16 sps:$4 sm:$0xff]   ;;  %v5251_v61 = vld [vmem:[#allocation6 + $0x340] ss:$16 sps:$4 sm:$0xff]  }
  0x7d   : > { %1885 = vmatpush1.bf16.msra.mxu0 %v5214_v30  ;;  %v5252_v62 = vld [vmem:[#allocation6 + $0x124] ss:$16 sps:$4 sm:$0xff]   ;;  %v5256_v0 = vld [vmem:[#allocation6 + $0x120] ss:$16 sps:$4 sm:$0xff]   ;;  %v247_v30 = vld [vmem:[%s5875_s27 + $0x48] sm:$0xff] }
  0x7e   : > { %1938 = vmatpush1.bf16.msra.mxu1 %v5215_v31  ;;  %1886 = vmatprep.subr.bf16.mxu0 %v5216_v32  ;;  %v5254_v63 = vld [vmem:[#allocation6 + $0x324] ss:$16 sps:$4 sm:$0xff]   ;;  %v5257_v1 = vld [vmem:[#allocation6 + $0x320] ss:$16 sps:$4 sm:$0xff]   ;;  %v251_v31 = vld [vmem:[%s5875_s27 + $0x68] sm:$0xff] }
  0x7f   : > { %1939 = vmatprep.subr.bf16.mxu1 %v5218_v33  ;;  %v5258_v2 = vld [vmem:[#allocation6 + $0x104] ss:$16 sps:$4 sm:$0xff]   ;;  %v5262_v4 = vld [vmem:[#allocation6 + $0x100] ss:$16 sps:$4 sm:$0xff]  }
  0x80   : > { %v5260_v3 = vld [vmem:[#allocation6 + $0x304] ss:$16 sps:$4 sm:$0xff]   ;;  %v5263_v5 = vld [vmem:[#allocation6 + $0x300] ss:$16 sps:$4 sm:$0xff]  }
  0x81   : > { %1887 = vmatpush2.bf16.msra.mxu0 %v5220_v34  ;;  %v5266_v6 = vld [vmem:[#allocation6 + $0x4e4] ss:$16 sps:$4 sm:$0xff]   ;;  %v5264_v10 = vld [vmem:[#allocation6 + $0x4e0] ss:$16 sps:$4 sm:$0xff]   ;;  %v5907_v34 = vcombine.high %v247_v30, %v251_v31 }
  0x82   : > { %1940 = vmatpush2.bf16.msra.mxu1 %v5221_v35  ;;  %1888 = vmatprep.subr.bf16.mxu0 %v5222_v36  ;;  %v5269_v7 = vld [vmem:[#allocation6 + $0x6e4] ss:$16 sps:$4 sm:$0xff]   ;;  %v5267_v11 = vld [vmem:[#allocation6 + $0x6e0] ss:$16 sps:$4 sm:$0xff]  }
  0x83   : > { %1941 = vmatprep.subr.bf16.mxu1 %v5224_v37  ;;  %v5272_v12 = vld [vmem:[#allocation6 + $0x4c4] ss:$16 sps:$4 sm:$0xff]   ;;  %v5270_v14 = vld [vmem:[#allocation6 + $0x4c0] ss:$16 sps:$4 sm:$0xff]   ;;  %v5911_v37 = vcombine.low %v247_v30, %v251_v31 }
  0x84   : > { %v5275_v13 = vld [vmem:[#allocation6 + $0x6c4] ss:$16 sps:$4 sm:$0xff]   ;;  %v5273_v15 = vld [vmem:[#allocation6 + $0x6c0] ss:$16 sps:$4 sm:$0xff]  }
  0x85   : > { %1889 = vmatpush2.bf16.msra.mxu0 %v5226_v38  ;;  %v5278_v16 = vld [vmem:[#allocation6 + $0x4a4] ss:$16 sps:$4 sm:$0xff]   ;;  %v5276_v18 = vld [vmem:[#allocation6 + $0x4a0] ss:$16 sps:$4 sm:$0xff]  }
  0x86   : > { %1942 = vmatpush2.bf16.msra.mxu1 %v5227_v39  ;;  %1890 = vmatprep.subr.bf16.mxu0 %v5228_v40  ;;  %v5281_v17 = vld [vmem:[#allocation6 + $0x6a4] ss:$16 sps:$4 sm:$0xff]   ;;  %v5279_v19 = vld [vmem:[#allocation6 + $0x6a0] ss:$16 sps:$4 sm:$0xff]  }
  0x87   : > { %1943 = vmatprep.subr.bf16.mxu1 %v5230_v41  ;;  %v5284_v20 = vld [vmem:[#allocation6 + $0x484] ss:$16 sps:$4 sm:$0xff]   ;;  %v5282_v22 = vld [vmem:[#allocation6 + $0x480] ss:$16 sps:$4 sm:$0xff]  }
  0x88   : > { %v5287_v21 = vld [vmem:[#allocation6 + $0x684] ss:$16 sps:$4 sm:$0xff]   ;;  %v5285_v23 = vld [vmem:[#allocation6 + $0x680] ss:$16 sps:$4 sm:$0xff]  }
  0x89   : > { %1891 = vmatpush2.bf16.msra.mxu0 %v5232_v42  ;;  %v5290_v24 = vld [vmem:[#allocation6 + $0x464] ss:$16 sps:$4 sm:$0xff]   ;;  %v5288_v26 = vld [vmem:[#allocation6 + $0x460] ss:$16 sps:$4 sm:$0xff]  }
  0x8a   : > { %1944 = vmatpush2.bf16.msra.mxu1 %v5233_v43  ;;  %1892 = vmatprep.subr.bf16.mxu0 %v5234_v44  ;;  %v5293_v25 = vld [vmem:[#allocation6 + $0x664] ss:$16 sps:$4 sm:$0xff]   ;;  %v5291_v27 = vld [vmem:[#allocation6 + $0x660] ss:$16 sps:$4 sm:$0xff]  }
  0x8b   : > { %1945 = vmatprep.subr.bf16.mxu1 %v5236_v45  ;;  %v246_v28 = vld [vmem:[%s5875_s27 + $0x40] sm:$0xff]  ;;  %v248_v30 = vld [vmem:[%s5875_s27 + $0x50] sm:$0xff] }
  0x8c   : > { %v250_v29 = vld [vmem:[%s5875_s27 + $0x60] sm:$0xff]  ;;  %v252_v31 = vld [vmem:[%s5875_s27 + $0x70] sm:$0xff] }
  0x8d   : > { %1893 = vmatpush2.bf16.msra.mxu0 %v5238_v46  ;;  %v5296_v32 = vld [vmem:[#allocation6 + $0x444] ss:$16 sps:$4 sm:$0xff]   ;;  %v5905_v33 = vcombine.high %v246_v28, %v250_v29  ;;  %v5909_v35 = vcombine.low %v246_v28, %v250_v29  ;;  %v5294_v38 = vld [vmem:[#allocation6 + $0x440] ss:$16 sps:$4 sm:$0xff]   ;;  %v5360_v28 = vld [vmem:[#allocation6 + $0xe8] ss:$16 sps:$4 sm:$0xff]  }
  0x8e   : > { %1946 = vmatpush2.bf16.msra.mxu1 %v5239_v47  ;;  %1894 = vmatprep.subr.bf16.mxu0 %v5240_v52  ;;  %v5299_v36 = vld [vmem:[#allocation6 + $0x644] ss:$16 sps:$4 sm:$0xff]   ;;  %v5297_v39 = vld [vmem:[#allocation6 + $0x640] ss:$16 sps:$4 sm:$0xff]   ;;  %v5363_v29 = vld [vmem:[#allocation6 + $0x2e8] ss:$16 sps:$4 sm:$0xff]  }
  0x8f   : > { %1947 = vmatprep.subr.bf16.mxu1 %v5242_v54  ;;  %v5302_v40 = vld [vmem:[#allocation6 + $0x424] ss:$16 sps:$4 sm:$0xff]   ;;  %v5300_v42 = vld [vmem:[#allocation6 + $0x420] ss:$16 sps:$4 sm:$0xff]  }
  0x90   : > { %v5305_v41 = vld [vmem:[#allocation6 + $0x624] ss:$16 sps:$4 sm:$0xff]   ;;  %v5303_v43 = vld [vmem:[#allocation6 + $0x620] ss:$16 sps:$4 sm:$0xff]  }
  0x91   : > { %1895 = vmatpush2.bf16.msra.mxu0 %v5244_v56  ;;  %v5308_v44 = vld [vmem:[#allocation6 + $0x404] ss:$16 sps:$4 sm:$0xff]   ;;  %v5306_v52 = vld [vmem:[#allocation6 + $0x400] ss:$16 sps:$4 sm:$0xff]  }
  0x92   : > { %1948 = vmatpush2.bf16.msra.mxu1 %v5245_v57  ;;  %1896 = vmatprep.subr.bf16.mxu0 %v5246_v58  ;;  %v5311_v45 = vld [vmem:[#allocation6 + $0x604] ss:$16 sps:$4 sm:$0xff]   ;;  %v5309_v54 = vld [vmem:[#allocation6 + $0x600] ss:$16 sps:$4 sm:$0xff]  }
  0x93   : > { %1949 = vmatprep.subr.bf16.mxu1 %v5248_v59  ;;  %v5918_v46 = vld [vmem:[%s5875_s27 + $0x10] sm:$0xff] }
  0x94   : > { %v5921_v47 = vld [vmem:[%s5875_s27 + $0x30] sm:$0xff] }
  0x95   : > { %1897 = vmatpush2.bf16.msra.mxu0 %v5250_v60  ;;  %v5928_v49 = vcombine.high %v5918_v46, %v5921_v47  ;;  %v5314_v56 = vld [vmem:[#allocation6 + $0x5e4] ss:$16 sps:$4 sm:$0xff]   ;;  %v5312_v58 = vld [vmem:[#allocation6 + $0x5e0] ss:$16 sps:$4 sm:$0xff]  }
  0x96   : > { %1950 = vmatpush2.bf16.msra.mxu1 %v5251_v61  ;;  %1898 = vmatprep.subr.bf16.mxu0 %v5252_v62  ;;  %v5317_v57 = vld [vmem:[#allocation6 + $0x7e4] ss:$16 sps:$4 sm:$0xff]   ;;  %v5315_v59 = vld [vmem:[#allocation6 + $0x7e0] ss:$16 sps:$4 sm:$0xff]  }
  0x97   : > { %1951 = vmatprep.subr.bf16.mxu1 %v5254_v63  ;;  %v5320_v60 = vld [vmem:[#allocation6 + $0x5c4] ss:$16 sps:$4 sm:$0xff]   ;;  %v5318_v62 = vld [vmem:[#allocation6 + $0x5c0] ss:$16 sps:$4 sm:$0xff]  }
  0x98   : > { %v5323_v61 = vld [vmem:[#allocation6 + $0x7c4] ss:$16 sps:$4 sm:$0xff]   ;;  %v5321_v63 = vld [vmem:[#allocation6 + $0x7c0] ss:$16 sps:$4 sm:$0xff]  }
  0x99   : > { %1899 = vmatpush2.bf16.msra.mxu0 %v5256_v0  ;;  %v5326_v0 = vld [vmem:[#allocation6 + $0x5a4] ss:$16 sps:$4 sm:$0xff]  }
  0x9a   : > { %1952 = vmatpush2.bf16.msra.mxu1 %v5257_v1  ;;  %1900 = vmatprep.subr.bf16.mxu0 %v5258_v2  ;;  %v5329_v1 = vld [vmem:[#allocation6 + $0x7a4] ss:$16 sps:$4 sm:$0xff]   ;;  %v5324_v2 = vld [vmem:[#allocation6 + $0x5a0] ss:$16 sps:$4 sm:$0xff]  }
  0x9b   : > { %1953 = vmatprep.subr.bf16.mxu1 %v5260_v3  ;;  %v5327_v3 = vld [vmem:[#allocation6 + $0x7a0] ss:$16 sps:$4 sm:$0xff]  }
  0x9d   : > { %1901 = vmatpush2.bf16.msra.mxu0 %v5262_v4  ;;  %v5332_v4 = vld [vmem:[#allocation6 + $0x584] ss:$16 sps:$4 sm:$0xff]  }
  0x9e   : > { %1954 = vmatpush2.bf16.msra.mxu1 %v5263_v5  ;;  %1976 = vmatprep.subr.bf16.mxu0 %v5266_v6  ;;  %v5335_v5 = vld [vmem:[#allocation6 + $0x784] ss:$16 sps:$4 sm:$0xff]   ;;  %v5330_v6 = vld [vmem:[#allocation6 + $0x580] ss:$16 sps:$4 sm:$0xff]  }
  0x9f   : > { %2029 = vmatprep.subr.bf16.mxu1 %v5269_v7  ;;  %v5333_v7 = vld [vmem:[#allocation6 + $0x780] ss:$16 sps:$4 sm:$0xff]  }
  0xa0   : > { %1903 = vmatmul.mubr.bf16.vlgmr.msra.gmra.mxu0 %v5895_v8 }
  0xa1   : > { %1956 = vmatmul.mubr.bf16.vlgmr.msra.gmra.mxu1 %v5897_v9  ;;  %1977 = vmatpush1.bf16.msra.mxu0 %v5264_v10  ;;  %v5338_v10 = vld [vmem:[#allocation6 + $0x564] ss:$16 sps:$4 sm:$0xff]  }
  0xa2   : > { %2030 = vmatpush1.bf16.msra.mxu1 %v5267_v11  ;;  %1978 = vmatprep.subr.bf16.mxu0 %v5272_v12  ;;  %v5341_v11 = vld [vmem:[#allocation6 + $0x764] ss:$16 sps:$4 sm:$0xff]   ;;  %v5336_v12 = vld [vmem:[#allocation6 + $0x560] ss:$16 sps:$4 sm:$0xff]  }
  0xa3   : > { %2031 = vmatprep.subr.bf16.mxu1 %v5275_v13  ;;  %1912 = vmatprep.mubr.bf16.mxu0 %v5905_v33  ;;  %v5339_v13 = vld [vmem:[#allocation6 + $0x760] ss:$16 sps:$4 sm:$0xff]  }
  0xa4   : > { %1965 = vmatprep.mubr.bf16.mxu1 %v5907_v34 }
  0xa5   : > { %1979 = vmatpush1.bf16.msra.mxu0 %v5270_v14  ;;  %v5344_v14 = vld [vmem:[#allocation6 + $0x544] ss:$16 sps:$4 sm:$0xff]  }
  0xa6   : > { %2032 = vmatpush1.bf16.msra.mxu1 %v5273_v15  ;;  %1980 = vmatprep.subr.bf16.mxu0 %v5278_v16  ;;  %v5347_v15 = vld [vmem:[#allocation6 + $0x744] ss:$16 sps:$4 sm:$0xff]   ;;  %v5342_v16 = vld [vmem:[#allocation6 + $0x540] ss:$16 sps:$4 sm:$0xff]  }
  0xa7   : > { %2033 = vmatprep.subr.bf16.mxu1 %v5281_v17  ;;  %v5345_v17 = vld [vmem:[#allocation6 + $0x740] ss:$16 sps:$4 sm:$0xff]  }
  0xa8   : > { %1913 = vmatmul.mubr.bf16.gmra.mxu0 %v5909_v35 }
  0xa9   : > { %1981 = vmatpush1.bf16.msra.mxu0 %v5276_v18  ;;  %1966 = vmatmul.mubr.bf16.gmra.mxu1 %v5911_v37  ;;  %v5350_v18 = vld [vmem:[#allocation6 + $0x524] ss:$16 sps:$4 sm:$0xff]  }
  0xaa   : > { %2034 = vmatpush1.bf16.msra.mxu1 %v5279_v19  ;;  %1982 = vmatprep.subr.bf16.mxu0 %v5284_v20  ;;  %v5353_v19 = vld [vmem:[#allocation6 + $0x724] ss:$16 sps:$4 sm:$0xff]   ;;  %v5348_v20 = vld [vmem:[#allocation6 + $0x520] ss:$16 sps:$4 sm:$0xff]  }
  0xab   : > { %2035 = vmatprep.subr.bf16.mxu1 %v5287_v21  ;;  %2008 = vmatprep.mubr.bf16.mxu0 %v5928_v49  ;;  %v5351_v21 = vld [vmem:[#allocation6 + $0x720] ss:$16 sps:$4 sm:$0xff]  }
  0xac   : > { %2061 = vmatprep.mubr.bf16.mxu1 %v5935_v51 }
  0xad   : > { %1983 = vmatpush1.bf16.msra.mxu0 %v5282_v22  ;;  %v5356_v22 = vld [vmem:[#allocation6 + $0x504] ss:$16 sps:$4 sm:$0xff]  }
  0xae   : > { %2036 = vmatpush1.bf16.msra.mxu1 %v5285_v23  ;;  %1984 = vmatprep.subr.bf16.mxu0 %v5290_v24  ;;  %v5359_v23 = vld [vmem:[#allocation6 + $0x704] ss:$16 sps:$4 sm:$0xff]   ;;  %v5354_v24 = vld [vmem:[#allocation6 + $0x500] ss:$16 sps:$4 sm:$0xff]  }
  0xaf   : > { %2037 = vmatprep.subr.bf16.mxu1 %v5293_v25  ;;  %v5357_v25 = vld [vmem:[#allocation6 + $0x700] ss:$16 sps:$4 sm:$0xff]  }
  0xb1   : > { %1985 = vmatpush1.bf16.msra.mxu0 %v5288_v26  ;;  %v5362_v26 = vld [vmem:[#allocation6 + $0xec] ss:$16 sps:$4 sm:$0xff]  }
  0xb2   : > { %2038 = vmatpush1.bf16.msra.mxu1 %v5291_v27  ;;  %1986 = vmatprep.subr.bf16.mxu0 %v5296_v32  ;;  %v5365_v27 = vld [vmem:[#allocation6 + $0x2ec] ss:$16 sps:$4 sm:$0xff]   ;;  %v5943_v32 = vcombine.low %v5918_v46, %v5921_v47 }
  0xb3   : > { %2039 = vmatprep.subr.bf16.mxu1 %v5299_v36  ;;  %v5947_v36 = vcombine.low %v5924_v48, %v5931_v50  ;;  %v5374_v46 = vld [vmem:[#allocation6 + $0xac] ss:$16 sps:$4 sm:$0xff]   ;;  %v5959_v48 = vcombine.low %v248_v30, %v252_v31  ;;  %v5372_v50 = vld [vmem:[#allocation6 + $0xa8] ss:$16 sps:$4 sm:$0xff]  }
  0xb4   : > { %v5377_v47 = vld [vmem:[#allocation6 + $0x2ac] ss:$16 sps:$4 sm:$0xff]  }
  0xb5   : > { %1987 = vmatpush1.bf16.msra.mxu0 %v5294_v38  ;;  %v249_v38 = vld [vmem:[%s5875_s27 + $0x58] sm:$0xff] }
  0xb6   : > { %2040 = vmatpush1.bf16.msra.mxu1 %v5297_v39  ;;  %1988 = vmatprep.subr.bf16.mxu0 %v5302_v40  ;;  %v253_v39 = vld [vmem:[%s5875_s27 + $0x78] sm:$0xff] }
  0xb7   : > { %2041 = vmatprep.subr.bf16.mxu1 %v5305_v41  ;;  %v5368_v40 = vld [vmem:[#allocation6 + $0xcc] ss:$16 sps:$4 sm:$0xff]  }
  0xb8   : > { %v5371_v41 = vld [vmem:[#allocation6 + $0x2cc] ss:$16 sps:$4 sm:$0xff]  }
  0xb9   : > { %1989 = vmatpush1.bf16.msra.mxu0 %v5300_v42  ;;  %v5951_v42 = vcombine.high %v248_v30, %v252_v31  ;;  %v5432_v30 = vld [vmem:[#allocation6 + $0x168] ss:$16 sps:$4 sm:$0xff]  }
  0xba   : > { %2042 = vmatpush1.bf16.msra.mxu1 %v5303_v43  ;;  %1990 = vmatprep.subr.bf16.mxu0 %v5308_v44  ;;  %v5953_v43 = vcombine.high %v249_v38, %v253_v39  ;;  %v5366_v44 = vld [vmem:[#allocation6 + $0xc8] ss:$16 sps:$4 sm:$0xff]  }
  0xbb   : > { %2043 = vmatprep.subr.bf16.mxu1 %v5311_v45  ;;  %v5369_v45 = vld [vmem:[#allocation6 + $0x2c8] ss:$16 sps:$4 sm:$0xff]  }
  0xbc   : > { %v5435_v31 = vld [vmem:[#allocation6 + $0x368] ss:$16 sps:$4 sm:$0xff]  }
  0xbd   : > { %1991 = vmatpush1.bf16.msra.mxu0 %v5306_v52  ;;  %v5375_v52 = vld [vmem:[#allocation6 + $0x2a8] ss:$16 sps:$4 sm:$0xff]  }
  0xbe   : > { %2044 = vmatpush1.bf16.msra.mxu1 %v5309_v54  ;;  %1992 = vmatprep.subr.bf16.mxu0 %v5314_v56  ;;  %v5961_v54 = vcombine.low %v249_v38, %v253_v39  ;;  %v5380_v56 = vld [vmem:[#allocation6 + $0x8c] ss:$16 sps:$4 sm:$0xff]  }
  0xbf   : > { %2045 = vmatprep.subr.bf16.mxu1 %v5317_v57  ;;  %v5383_v57 = vld [vmem:[#allocation6 + $0x28c] ss:$16 sps:$4 sm:$0xff]  }
  0xc0   : > { %v5440_v38 = vld [vmem:[#allocation6 + $0x14c] ss:$16 sps:$4 sm:$0xff]  }
  0xc1   : > { %1993 = vmatpush2.bf16.msra.mxu0 %v5312_v58  ;;  %v5378_v58 = vld [vmem:[#allocation6 + $0x88] ss:$16 sps:$4 sm:$0xff]   ;;  %v5443_v39 = vld [vmem:[#allocation6 + $0x34c] ss:$16 sps:$4 sm:$0xff]  }
  0xc2   : > { %2046 = vmatpush2.bf16.msra.mxu1 %v5315_v59  ;;  %1994 = vmatprep.subr.bf16.mxu0 %v5320_v60  ;;  %v5381_v59 = vld [vmem:[#allocation6 + $0x288] ss:$16 sps:$4 sm:$0xff]   ;;  %v5386_v60 = vld [vmem:[#allocation6 + $0x6c] ss:$16 sps:$4 sm:$0xff]  }
  0xc3   : > { %2047 = vmatprep.subr.bf16.mxu1 %v5323_v61  ;;  %v5389_v61 = vld [vmem:[#allocation6 + $0x26c] ss:$16 sps:$4 sm:$0xff]  }
  0xc5   : > { %1995 = vmatpush2.bf16.msra.mxu0 %v5318_v62  ;;  %v5384_v62 = vld [vmem:[#allocation6 + $0x68] ss:$16 sps:$4 sm:$0xff]  }
  0xc6   : > { %2048 = vmatpush2.bf16.msra.mxu1 %v5321_v63  ;;  %1996 = vmatprep.subr.bf16.mxu0 %v5326_v0  ;;  %v5387_v63 = vld [vmem:[#allocation6 + $0x268] ss:$16 sps:$4 sm:$0xff]   ;;  %v5392_v0 = vld [vmem:[#allocation6 + $0x4c] ss:$16 sps:$4 sm:$0xff]  }
  0xc7   : > { %2049 = vmatprep.subr.bf16.mxu1 %v5329_v1  ;;  %v5395_v1 = vld [vmem:[#allocation6 + $0x24c] ss:$16 sps:$4 sm:$0xff]  }
  0xc9   : > { %1997 = vmatpush2.bf16.msra.mxu0 %v5324_v2  ;;  %v5390_v2 = vld [vmem:[#allocation6 + $0x48] ss:$16 sps:$4 sm:$0xff]  }
  0xca   : > { %2050 = vmatpush2.bf16.msra.mxu1 %v5327_v3  ;;  %1998 = vmatprep.subr.bf16.mxu0 %v5332_v4  ;;  %v5393_v3 = vld [vmem:[#allocation6 + $0x248] ss:$16 sps:$4 sm:$0xff]   ;;  %v5398_v4 = vld [vmem:[#allocation6 + $0x2c] ss:$16 sps:$4 sm:$0xff]  }
  0xcb   : > { %2051 = vmatprep.subr.bf16.mxu1 %v5335_v5  ;;  %v5401_v5 = vld [vmem:[#allocation6 + $0x22c] ss:$16 sps:$4 sm:$0xff]  }
  0xcd   : > { %1999 = vmatpush2.bf16.msra.mxu0 %v5330_v6  ;;  %v5396_v6 = vld [vmem:[#allocation6 + $0x28] ss:$16 sps:$4 sm:$0xff]  }
  0xce   : > { %2052 = vmatpush2.bf16.msra.mxu1 %v5333_v7  ;;  %2000 = vmatprep.subr.bf16.mxu0 %v5338_v10  ;;  %v5407_v7 = vld [vmem:[#allocation6 + $0x20c] ss:$16 sps:$4 sm:$0xff]   ;;  %v5402_v10 = vld [vmem:[#allocation6 + $0x8] ss:$16 sps:$4 sm:$0xff]  }
  0xcf   : > { %2053 = vmatprep.subr.bf16.mxu1 %v5341_v11  ;;  %v5405_v11 = vld [vmem:[#allocation6 + $0x208] ss:$16 sps:$4 sm:$0xff]  }
  0xd1   : > { %2001 = vmatpush2.bf16.msra.mxu0 %v5336_v12  ;;  %v5410_v12 = vld [vmem:[#allocation6 + $0x1ec] ss:$16 sps:$4 sm:$0xff]  }
  0xd2   : > { %2054 = vmatpush2.bf16.msra.mxu1 %v5339_v13  ;;  %2002 = vmatprep.subr.bf16.mxu0 %v5344_v14  ;;  %v5413_v13 = vld [vmem:[#allocation6 + $0x3ec] ss:$16 sps:$4 sm:$0xff]   ;;  %v5408_v14 = vld [vmem:[#allocation6 + $0x1e8] ss:$16 sps:$4 sm:$0xff]  }
  0xd3   : > { %2055 = vmatprep.subr.bf16.mxu1 %v5347_v15  ;;  %v5411_v15 = vld [vmem:[#allocation6 + $0x3e8] ss:$16 sps:$4 sm:$0xff]  }
  0xd5   : > { %2003 = vmatpush2.bf16.msra.mxu0 %v5342_v16  ;;  %v5416_v16 = vld [vmem:[#allocation6 + $0x1cc] ss:$16 sps:$4 sm:$0xff]  }
  0xd6   : > { %2056 = vmatpush2.bf16.msra.mxu1 %v5345_v17  ;;  %2004 = vmatprep.subr.bf16.mxu0 %v5350_v18  ;;  %v5419_v17 = vld [vmem:[#allocation6 + $0x3cc] ss:$16 sps:$4 sm:$0xff]   ;;  %v5414_v18 = vld [vmem:[#allocation6 + $0x1c8] ss:$16 sps:$4 sm:$0xff]  }
  0xd7   : > { %2057 = vmatprep.subr.bf16.mxu1 %v5353_v19  ;;  %v5417_v19 = vld [vmem:[#allocation6 + $0x3c8] ss:$16 sps:$4 sm:$0xff]  }
  0xd9   : > { %2005 = vmatpush2.bf16.msra.mxu0 %v5348_v20  ;;  %v5422_v20 = vld [vmem:[#allocation6 + $0x1ac] ss:$16 sps:$4 sm:$0xff]  }
  0xda   : > { %2058 = vmatpush2.bf16.msra.mxu1 %v5351_v21  ;;  %2006 = vmatprep.subr.bf16.mxu0 %v5356_v22  ;;  %v5425_v21 = vld [vmem:[#allocation6 + $0x3ac] ss:$16 sps:$4 sm:$0xff]   ;;  %v5420_v22 = vld [vmem:[#allocation6 + $0x1a8] ss:$16 sps:$4 sm:$0xff]  }
  0xdb   : > { %2059 = vmatprep.subr.bf16.mxu1 %v5359_v23  ;;  %v5423_v23 = vld [vmem:[#allocation6 + $0x3a8] ss:$16 sps:$4 sm:$0xff]  }
  0xdd   : > { %2007 = vmatpush2.bf16.msra.mxu0 %v5354_v24  ;;  %v5428_v24 = vld [vmem:[#allocation6 + $0x18c] ss:$16 sps:$4 sm:$0xff]  }
  0xde   : > { %2060 = vmatpush2.bf16.msra.mxu1 %v5357_v25  ;;  %2082 = vmatprep.subr.bf16.mxu0 %v5362_v26  ;;  %v5431_v25 = vld [vmem:[#allocation6 + $0x38c] ss:$16 sps:$4 sm:$0xff]   ;;  %v5426_v26 = vld [vmem:[#allocation6 + $0x188] ss:$16 sps:$4 sm:$0xff]  }
  0xdf   : > { %2135 = vmatprep.subr.bf16.mxu1 %v5365_v27  ;;  %v5429_v27 = vld [vmem:[#allocation6 + $0x388] ss:$16 sps:$4 sm:$0xff]  }
  0xe0   : > { %2009 = vmatmul.mubr.bf16.vlgmr.msra.gmra.mxu0 %v5943_v32 }
  0xe1   : > { %2062 = vmatmul.mubr.bf16.vlgmr.msra.gmra.mxu1 %v5947_v36  ;;  %2083 = vmatpush1.bf16.msra.mxu0 %v5360_v28  ;;  %v5434_v28 = vld [vmem:[#allocation6 + $0x16c] ss:$16 sps:$4 sm:$0xff]  }
  0xe2   : > { %2136 = vmatpush1.bf16.msra.mxu1 %v5363_v29  ;;  %2084 = vmatprep.subr.bf16.mxu0 %v5368_v40  ;;  %v5437_v29 = vld [vmem:[#allocation6 + $0x36c] ss:$16 sps:$4 sm:$0xff]   ;;  %v5438_v40 = vld [vmem:[#allocation6 + $0x148] ss:$16 sps:$4 sm:$0xff]  }
  0xe3   : > { %2137 = vmatprep.subr.bf16.mxu1 %v5371_v41  ;;  %2018 = vmatprep.mubr.bf16.mxu0 %v5951_v42  ;;  %v5441_v41 = vld [vmem:[#allocation6 + $0x348] ss:$16 sps:$4 sm:$0xff]  }
  0xe4   : > { %2071 = vmatprep.mubr.bf16.mxu1 %v5953_v43 }
  0xe5   : > { %2085 = vmatpush1.bf16.msra.mxu0 %v5366_v44  ;;  %v5446_v44 = vld [vmem:[#allocation6 + $0x12c] ss:$16 sps:$4 sm:$0xff]  }
  0xe6   : > { %2138 = vmatpush1.bf16.msra.mxu1 %v5369_v45  ;;  %2086 = vmatprep.subr.bf16.mxu0 %v5374_v46  ;;  %v5449_v45 = vld [vmem:[#allocation6 + $0x32c] ss:$16 sps:$4 sm:$0xff]   ;;  %v5444_v46 = vld [vmem:[#allocation6 + $0x128] ss:$16 sps:$4 sm:$0xff]  }
  0xe7   : > { %2139 = vmatprep.subr.bf16.mxu1 %v5377_v47  ;;  %v5447_v47 = vld [vmem:[#allocation6 + $0x328] ss:$16 sps:$4 sm:$0xff]  }
  0xe8   : > { %2019 = vmatmul.mubr.bf16.gmra.mxu0 %v5959_v48 }
  0xe9   : > { %2072 = vmatmul.mubr.bf16.gmra.mxu1 %v5961_v54  ;;  %2087 = vmatpush1.bf16.msra.mxu0 %v5372_v50  ;;  %v5452_v50 = vld [vmem:[#allocation6 + $0x10c] ss:$16 sps:$4 sm:$0xff]  }
  0xea   : > { %2140 = vmatpush1.bf16.msra.mxu1 %v5375_v52  ;;  %2088 = vmatprep.subr.bf16.mxu0 %v5380_v56  ;;  %v5455_v52 = vld [vmem:[#allocation6 + $0x30c] ss:$16 sps:$4 sm:$0xff]   ;;  %v5450_v56 = vld [vmem:[#allocation6 + $0x108] ss:$16 sps:$4 sm:$0xff]  }
  0xeb   : > { %2141 = vmatprep.subr.bf16.mxu1 %v5383_v57  ;;  %2114 = vmatprep.mubr.bf16.mxu0 %v5889_v53  ;;  %v5399_v53 = vld [vmem:[#allocation6 + $0x228] ss:$16 sps:$4 sm:$0xff]  }
  0xec   : > { %2167 = vmatprep.mubr.bf16.mxu1 %v5891_v55  ;;  %v5404_v55 = vld [vmem:[#allocation6 + $0xc] ss:$16 sps:$4 sm:$0xff]   ;;  %v5453_v57 = vld [vmem:[#allocation6 + $0x308] ss:$16 sps:$4 sm:$0xff]  }
  0xed   : > { %2089 = vmatpush1.bf16.msra.mxu0 %v5378_v58  ;;  %v5458_v58 = vld [vmem:[#allocation6 + $0x4ec] ss:$16 sps:$4 sm:$0xff]  }
  0xee   : > { %2142 = vmatpush1.bf16.msra.mxu1 %v5381_v59  ;;  %2090 = vmatprep.subr.bf16.mxu0 %v5386_v60  ;;  %v5461_v59 = vld [vmem:[#allocation6 + $0x6ec] ss:$16 sps:$4 sm:$0xff]   ;;  %v5456_v60 = vld [vmem:[#allocation6 + $0x4e8] ss:$16 sps:$4 sm:$0xff]  }
  0xef   : > { %2143 = vmatprep.subr.bf16.mxu1 %v5389_v61  ;;  %v5459_v61 = vld [vmem:[#allocation6 + $0x6e8] ss:$16 sps:$4 sm:$0xff]  }
  0xf1   : > { %2091 = vmatpush1.bf16.msra.mxu0 %v5384_v62  ;;  %v5464_v62 = vld [vmem:[#allocation6 + $0x4cc] ss:$16 sps:$4 sm:$0xff]  }
  0xf2   : > { %2144 = vmatpush1.bf16.msra.mxu1 %v5387_v63  ;;  %2092 = vmatprep.subr.bf16.mxu0 %v5392_v0  ;;  %v5467_v63 = vld [vmem:[#allocation6 + $0x6cc] ss:$16 sps:$4 sm:$0xff]   ;;  %v5462_v0 = vld [vmem:[#allocation6 + $0x4c8] ss:$16 sps:$4 sm:$0xff]  }
  0xf3   : > { %2145 = vmatprep.subr.bf16.mxu1 %v5395_v1  ;;  %v5465_v1 = vld [vmem:[#allocation6 + $0x6c8] ss:$16 sps:$4 sm:$0xff]  }
  0xf5   : > { %2093 = vmatpush1.bf16.msra.mxu0 %v5390_v2  ;;  %v5470_v2 = vld [vmem:[#allocation6 + $0x4ac] ss:$16 sps:$4 sm:$0xff]  }
  0xf6   : > { %2146 = vmatpush1.bf16.msra.mxu1 %v5393_v3  ;;  %2094 = vmatprep.subr.bf16.mxu0 %v5398_v4  ;;  %v5473_v3 = vld [vmem:[#allocation6 + $0x6ac] ss:$16 sps:$4 sm:$0xff]   ;;  %v5468_v4 = vld [vmem:[#allocation6 + $0x4a8] ss:$16 sps:$4 sm:$0xff]  }
  0xf7   : > { %2147 = vmatprep.subr.bf16.mxu1 %v5401_v5  ;;  %v5471_v5 = vld [vmem:[#allocation6 + $0x6a8] ss:$16 sps:$4 sm:$0xff]  }
  0xf9   : > { %2095 = vmatpush1.bf16.msra.mxu0 %v5396_v6  ;;  %v5474_v6 = vld [vmem:[#allocation6 + $0x488] ss:$16 sps:$4 sm:$0xff]  }
  0xfa   : > { %2148 = vmatpush1.bf16.msra.mxu1 %v5399_v53  ;;  %2096 = vmatprep.subr.bf16.mxu0 %v5404_v55  ;;  %v5477_v53 = vld [vmem:[#allocation6 + $0x688] ss:$16 sps:$4 sm:$0xff]  }
  0xfb   : > { %2149 = vmatprep.subr.bf16.mxu1 %v5407_v7  ;;  %v5480_v55 = vld [vmem:[#allocation6 + $0x468] ss:$16 sps:$4 sm:$0xff]  }
  0xfc   : > { %v5483_v7 = vld [vmem:[#allocation6 + $0x668] ss:$16 sps:$4 sm:$0xff]  }
  0xfd   : > { %2097 = vmatpush1.bf16.msra.mxu0 %v5402_v10  ;;  %v5486_v10 = vld [vmem:[#allocation6 + $0x448] ss:$16 sps:$4 sm:$0xff]  }
  0xfe   : > { %2150 = vmatpush1.bf16.msra.mxu1 %v5405_v11  ;;  %2098 = vmatprep.subr.bf16.mxu0 %v5410_v12  ;;  %v5489_v11 = vld [vmem:[#allocation6 + $0x648] ss:$16 sps:$4 sm:$0xff]   ;;  %v5494_v12 = vld [vmem:[#allocation6 + $0x42c] ss:$16 sps:$4 sm:$0xff]  }
  0xff   : > { %2151 = vmatprep.subr.bf16.mxu1 %v5413_v13  ;;  %v5497_v13 = vld [vmem:[#allocation6 + $0x62c] ss:$16 sps:$4 sm:$0xff]  }
 0x101   : > { %2099 = vmatpush2.bf16.msra.mxu0 %v5408_v14  ;;  %v5500_v14 = vld [vmem:[#allocation6 + $0x40c] ss:$16 sps:$4 sm:$0xff]  }
 0x102   : > { %2152 = vmatpush2.bf16.msra.mxu1 %v5411_v15  ;;  %2100 = vmatprep.subr.bf16.mxu0 %v5416_v16  ;;  %v5503_v15 = vld [vmem:[#allocation6 + $0x60c] ss:$16 sps:$4 sm:$0xff]   ;;  %v5498_v16 = vld [vmem:[#allocation6 + $0x408] ss:$16 sps:$4 sm:$0xff]  }
 0x103   : > { %2153 = vmatprep.subr.bf16.mxu1 %v5419_v17  ;;  %v5501_v17 = vld [vmem:[#allocation6 + $0x608] ss:$16 sps:$4 sm:$0xff]  }
 0x105   : > { %2101 = vmatpush2.bf16.msra.mxu0 %v5414_v18  ;;  %v5506_v18 = vld [vmem:[#allocation6 + $0x5ec] ss:$16 sps:$4 sm:$0xff]  }
 0x106   : > { %2154 = vmatpush2.bf16.msra.mxu1 %v5417_v19  ;;  %2102 = vmatprep.subr.bf16.mxu0 %v5422_v20  ;;  %v5509_v19 = vld [vmem:[#allocation6 + $0x7ec] ss:$16 sps:$4 sm:$0xff]   ;;  %v5504_v20 = vld [vmem:[#allocation6 + $0x5e8] ss:$16 sps:$4 sm:$0xff]  }
 0x107   : > { %2155 = vmatprep.subr.bf16.mxu1 %v5425_v21  ;;  %v5507_v21 = vld [vmem:[#allocation6 + $0x7e8] ss:$16 sps:$4 sm:$0xff]  }
 0x109   : > { %2103 = vmatpush2.bf16.msra.mxu0 %v5420_v22  ;;  %v5512_v22 = vld [vmem:[#allocation6 + $0x5cc] ss:$16 sps:$4 sm:$0xff]  }
 0x10a   : > { %2156 = vmatpush2.bf16.msra.mxu1 %v5423_v23  ;;  %2104 = vmatprep.subr.bf16.mxu0 %v5428_v24  ;;  %v5515_v23 = vld [vmem:[#allocation6 + $0x7cc] ss:$16 sps:$4 sm:$0xff]   ;;  %v5510_v24 = vld [vmem:[#allocation6 + $0x5c8] ss:$16 sps:$4 sm:$0xff]  }
 0x10b   : > { %2157 = vmatprep.subr.bf16.mxu1 %v5431_v25  ;;  %v5513_v25 = vld [vmem:[#allocation6 + $0x7c8] ss:$16 sps:$4 sm:$0xff]  }
 0x10d   : > { %2105 = vmatpush2.bf16.msra.mxu0 %v5426_v26  ;;  %v5518_v26 = vld [vmem:[#allocation6 + $0x5ac] ss:$16 sps:$4 sm:$0xff]  }
 0x10e   : > { %2158 = vmatpush2.bf16.msra.mxu1 %v5429_v27  ;;  %2106 = vmatprep.subr.bf16.mxu0 %v5434_v28  ;;  %v5521_v27 = vld [vmem:[#allocation6 + $0x7ac] ss:$16 sps:$4 sm:$0xff]   ;;  %v5516_v28 = vld [vmem:[#allocation6 + $0x5a8] ss:$16 sps:$4 sm:$0xff]  }
 0x10f   : > { %2159 = vmatprep.subr.bf16.mxu1 %v5437_v29  ;;  %v5519_v29 = vld [vmem:[#allocation6 + $0x7a8] ss:$16 sps:$4 sm:$0xff]  }
 0x111   : > { %2107 = vmatpush2.bf16.msra.mxu0 %v5432_v30  ;;  %v5524_v30 = vld [vmem:[#allocation6 + $0x58c] ss:$16 sps:$4 sm:$0xff]  }
 0x112   : > { %2160 = vmatpush2.bf16.msra.mxu1 %v5435_v31  ;;  %2108 = vmatprep.subr.bf16.mxu0 %v5440_v38  ;;  %v5527_v31 = vld [vmem:[#allocation6 + $0x78c] ss:$16 sps:$4 sm:$0xff]   ;;  %v5522_v38 = vld [vmem:[#allocation6 + $0x588] ss:$16 sps:$4 sm:$0xff]  }
 0x113   : > { %2161 = vmatprep.subr.bf16.mxu1 %v5443_v39  ;;  %v5525_v39 = vld [vmem:[#allocation6 + $0x788] ss:$16 sps:$4 sm:$0xff]  }
 0x115   : > { %2109 = vmatpush2.bf16.msra.mxu0 %v5438_v40  ;;  %v5530_v40 = vld [vmem:[#allocation6 + $0x56c] ss:$16 sps:$4 sm:$0xff]  }
 0x116   : > { %2162 = vmatpush2.bf16.msra.mxu1 %v5441_v41  ;;  %2110 = vmatprep.subr.bf16.mxu0 %v5446_v44  ;;  %v5533_v41 = vld [vmem:[#allocation6 + $0x76c] ss:$16 sps:$4 sm:$0xff]   ;;  %v5528_v44 = vld [vmem:[#allocation6 + $0x568] ss:$16 sps:$4 sm:$0xff]  }
 0x117   : > { %2163 = vmatprep.subr.bf16.mxu1 %v5449_v45  ;;  %v5531_v45 = vld [vmem:[#allocation6 + $0x768] ss:$16 sps:$4 sm:$0xff]  }
 0x119   : > { %2111 = vmatpush2.bf16.msra.mxu0 %v5444_v46  ;;  %v5536_v46 = vld [vmem:[#allocation6 + $0x54c] ss:$16 sps:$4 sm:$0xff]  }
 0x11a   : > { %2164 = vmatpush2.bf16.msra.mxu1 %v5447_v47  ;;  %2112 = vmatprep.subr.bf16.mxu0 %v5452_v50  ;;  %v5539_v47 = vld [vmem:[#allocation6 + $0x74c] ss:$16 sps:$4 sm:$0xff]   ;;  %v5534_v50 = vld [vmem:[#allocation6 + $0x548] ss:$16 sps:$4 sm:$0xff]  }
 0x11b   : > { %2165 = vmatprep.subr.bf16.mxu1 %v5455_v52  ;;  %v5537_v52 = vld [vmem:[#allocation6 + $0x748] ss:$16 sps:$4 sm:$0xff]  }
 0x11d   : > { %2113 = vmatpush2.bf16.msra.mxu0 %v5450_v56  ;;  %v5542_v56 = vld [vmem:[#allocation6 + $0x52c] ss:$16 sps:$4 sm:$0xff]  }
 0x11e   : > { %2166 = vmatpush2.bf16.msra.mxu1 %v5453_v57  ;;  %2188 = vmatprep.subr.bf16.mxu0 %v5458_v58  ;;  %v5545_v57 = vld [vmem:[#allocation6 + $0x72c] ss:$16 sps:$4 sm:$0xff]   ;;  %v5540_v58 = vld [vmem:[#allocation6 + $0x528] ss:$16 sps:$4 sm:$0xff]  }
 0x11f   : > { %2241 = vmatprep.subr.bf16.mxu1 %v5461_v59  ;;  %v5543_v59 = vld [vmem:[#allocation6 + $0x728] ss:$16 sps:$4 sm:$0xff]  }
 0x120   : > { %2115 = vmatmul.mubr.bf16.vlgmr.msra.gmra.mxu0 %v5895_v8  ;;  %v5476_v8 = vld [vmem:[#allocation6 + $0x48c] ss:$16 sps:$4 sm:$0xff]  }
 0x121   : > { %2168 = vmatmul.mubr.bf16.vlgmr.msra.gmra.mxu1 %v5897_v9  ;;  %2189 = vmatpush1.bf16.msra.mxu0 %v5456_v60  ;;  %v5479_v9 = vld [vmem:[#allocation6 + $0x68c] ss:$16 sps:$4 sm:$0xff]  }
 0x122   : > { %2242 = vmatpush1.bf16.msra.mxu1 %v5459_v61  ;;  %2190 = vmatprep.subr.bf16.mxu0 %v5464_v62  ;;  %v5548_v60 = vld [vmem:[#allocation6 + $0x50c] ss:$16 sps:$4 sm:$0xff]   ;;  %v2414_v62 = vld [vmem:[#allocation8 + $0x1c0] sm:$0xff] }
 0x123   : > { %2243 = vmatprep.subr.bf16.mxu1 %v5467_v63  ;;  %2124 = vmatprep.mubr.bf16.mxu0 %v5905_v33  ;;  %v5482_v33 = vld [vmem:[#allocation6 + $0x46c] ss:$16 sps:$4 sm:$0xff]   ;;  %v2418_v63 = vld [vmem:[#allocation8 + $0x1e0] sm:$0xff] }
 0x124   : > { %2177 = vmatprep.mubr.bf16.mxu1 %v5907_v34  ;;  %v5485_v34 = vld [vmem:[#allocation6 + $0x66c] ss:$16 sps:$4 sm:$0xff]  }
 0x125   : > { %2191 = vmatpush1.bf16.msra.mxu0 %v5462_v0  ;;  %v5551_v61 = vld [vmem:[#allocation6 + $0x70c] ss:$16 sps:$4 sm:$0xff]   ;;  %v5546_v0 = vld [vmem:[#allocation6 + $0x508] ss:$16 sps:$4 sm:$0xff]  }
 0x126   : > { %2244 = vmatpush1.bf16.msra.mxu1 %v5465_v1  ;;  %2192 = vmatprep.subr.bf16.mxu0 %v5470_v2  ;;  %v5549_v1 = vld [vmem:[#allocation6 + $0x708] ss:$16 sps:$4 sm:$0xff]   ;;  %v4868_v2 = vcombine.high %v2414_v62, %v2418_v63 }
 0x127   : > { %2245 = vmatprep.subr.bf16.mxu1 %v5473_v3  ;;  %v2406_v3 = vld [vmem:[#allocation8 + $0x180] sm:$0xff] }
 0x128   : > { %2125 = vmatmul.mubr.bf16.gmra.mxu0 %v5909_v35  ;;  %v5488_v35 = vld [vmem:[#allocation6 + $0x44c] ss:$16 sps:$4 sm:$0xff]  }
 0x129   : > { %2178 = vmatmul.mubr.bf16.gmra.mxu1 %v5911_v37  ;;  %2193 = vmatpush1.bf16.msra.mxu0 %v5468_v4  ;;  %v5491_v37 = vld [vmem:[#allocation6 + $0x64c] ss:$16 sps:$4 sm:$0xff]   ;;  %v2410_v4 = vld [vmem:[#allocation8 + $0x1a0] sm:$0xff] }
 0x12a   : > { %2246 = vmatpush1.bf16.msra.mxu1 %v5471_v5  ;;  %2194 = vmatprep.subr.bf16.mxu0 %v5476_v8  ;;  %v4867_v5 = vcombine.low %v2414_v62, %v2418_v63  ;;  %v4860_v8 = vcombine.high %v2406_v3, %v2410_v4  ;;  %v2466_v62 = vld [vmem:[#allocation8 + $0x360] sm:$0xff] }
 0x12b   : > { %2247 = vmatprep.subr.bf16.mxu1 %v5479_v9  ;;  %2220 = vmatprep.mubr.bf16.mxu0 %v5928_v49  ;;  %v5492_v49 = vld [vmem:[#allocation6 + $0x428] ss:$16 sps:$4 sm:$0xff]   ;;  %v2398_v9 = vld [vmem:[#allocation8 + $0x140] sm:$0xff] }
 0x12c   : > { %2273 = vmatprep.mubr.bf16.mxu1 %v5935_v51  ;;  %v5495_v51 = vld [vmem:[#allocation6 + $0x628] ss:$16 sps:$4 sm:$0xff]  }
 0x12d   : > { %2195 = vmatpush1.bf16.msra.mxu0 %v5474_v6  ;;  %v2402_v6 = vld [vmem:[#allocation8 + $0x160] sm:$0xff] }
 0x12e   : > { %2248 = vmatpush1.bf16.msra.mxu1 %v5477_v53  ;;  %2196 = vmatprep.subr.bf16.mxu0 %v5482_v33  ;;  %v4859_v53 = vcombine.low %v2406_v3, %v2410_v4  ;;  %v4852_v33 = vcombine.high %v2398_v9, %v2402_v6  ;;  %v2494_v3 = vld [vmem:[#allocation8 + $0x440] sm:$0xff] }
 0x12f   : > { %2249 = vmatprep.subr.bf16.mxu1 %v5485_v34  ;;  %v2390_v34 = vld [vmem:[#allocation8 + $0x100] sm:$0xff] }
 0x130   : > { %v2498_v4 = vld [vmem:[#allocation8 + $0x460] sm:$0xff] }
 0x131   : > { %2197 = vmatpush1.bf16.msra.mxu0 %v5480_v55  ;;  %v2394_v55 = vld [vmem:[#allocation8 + $0x120] sm:$0xff] }
 0x132   : > { %2250 = vmatpush1.bf16.msra.mxu1 %v5483_v7  ;;  %2198 = vmatprep.subr.bf16.mxu0 %v5488_v35  ;;  %v4851_v7 = vcombine.low %v2398_v9, %v2402_v6  ;;  %v4844_v35 = vcombine.high %v2390_v34, %v2394_v55  ;;  %v2454_v9 = vld [vmem:[#allocation8 + $0x300] sm:$0xff] }
 0x133   : > { %2251 = vmatprep.subr.bf16.mxu1 %v5491_v37  ;;  %v2542_v37 = vld [vmem:[#allocation8 + $0x5c0] sm:$0xff] }
 0x134   : > { %v2458_v6 = vld [vmem:[#allocation8 + $0x320] sm:$0xff] }
 0x135   : > { %2199 = vmatpush1.bf16.msra.mxu0 %v5486_v10  ;;  %v2546_v10 = vld [vmem:[#allocation8 + $0x5e0] sm:$0xff] }
 0x136   : > { %2252 = vmatpush1.bf16.msra.mxu1 %v5489_v11  ;;  %2200 = vmatprep.subr.bf16.mxu0 %v5494_v12  ;;  %v2374_v11 = vld [vmem:[#allocation8 + $0x80] sm:$0xff] }
 0x137   : > { %2253 = vmatprep.subr.bf16.mxu1 %v5497_v13  ;;  %v2378_v12 = vld [vmem:[#allocation8 + $0xa0] sm:$0xff]  ;;  %v4995_v13 = vcombine.low %v2542_v37, %v2546_v10 }
 0x139   : > { %2201 = vmatpush1.bf16.msra.mxu0 %v5492_v49  ;;  %v4996_v49 = vcombine.high %v2542_v37, %v2546_v10 }
 0x13a   : > { %2254 = vmatpush1.bf16.msra.mxu1 %v5495_v51  ;;  %2202 = vmatprep.subr.bf16.mxu0 %v5500_v14  ;;  %v4828_v14 = vcombine.high %v2374_v11, %v2378_v12 }
 0x13b   : > { %2255 = vmatprep.subr.bf16.mxu1 %v5503_v15  ;;  %v2366_v15 = vld [vmem:[#allocation8 + $0x40] sm:$0xff] }
 0x13d   : > { %2203 = vmatpush1.bf16.msra.mxu0 %v5498_v16  ;;  %v2370_v16 = vld [vmem:[#allocation8 + $0x60] sm:$0xff] }
 0x13e   : > { %2256 = vmatpush1.bf16.msra.mxu1 %v5501_v17  ;;  %2204 = vmatprep.subr.bf16.mxu0 %v5506_v18 }
 0x13f   : > { %2257 = vmatprep.subr.bf16.mxu1 %v5509_v19  ;;  %v4827_v19 = vcombine.low %v2374_v11, %v2378_v12  ;;  %v4907_v11 = vcombine.low %v2454_v9, %v2458_v6 }
 0x141   : > { %2205 = vmatpush2.bf16.msra.mxu0 %v5504_v20  ;;  %v4820_v20 = vcombine.high %v2366_v15, %v2370_v16 }
 0x142   : > { %2258 = vmatpush2.bf16.msra.mxu1 %v5507_v21  ;;  %2206 = vmatprep.subr.bf16.mxu0 %v5512_v22  ;;  %v2526_v21 = vld [vmem:[#allocation8 + $0x540] sm:$0xff] }
 0x143   : > { %2259 = vmatprep.subr.bf16.mxu1 %v5515_v23  ;;  %v2530_v22 = vld [vmem:[#allocation8 + $0x560] sm:$0xff] }
 0x144   : > { %v2358_v23 = vld [vmem:[#allocation8] sm:$0xff] }
 0x145   : > { %2207 = vmatpush2.bf16.msra.mxu0 %v5510_v24  ;;  %v2362_v24 = vld [vmem:[#allocation8 + $0x20] sm:$0xff] }
 0x146   : > { %2260 = vmatpush2.bf16.msra.mxu1 %v5513_v25  ;;  %2208 = vmatprep.subr.bf16.mxu0 %v5518_v26  ;;  %v4979_v25 = vcombine.low %v2526_v21, %v2530_v22  ;;  %v4980_v26 = vcombine.high %v2526_v21, %v2530_v22 }
 0x147   : > { %2261 = vmatprep.subr.bf16.mxu1 %v5521_v27  ;;  %v4819_v27 = vcombine.low %v2366_v15, %v2370_v16 }
 0x149   : > { %2209 = vmatpush2.bf16.msra.mxu0 %v5516_v28  ;;  %v4812_v28 = vcombine.high %v2358_v23, %v2362_v24 }
 0x14a   : > { %2262 = vmatpush2.bf16.msra.mxu1 %v5519_v29  ;;  %2210 = vmatprep.subr.bf16.mxu0 %v5524_v30  ;;  %v2518_v29 = vld [vmem:[#allocation8 + $0x500] sm:$0xff] }
 0x14b   : > { %2263 = vmatprep.subr.bf16.mxu1 %v5527_v31  ;;  %v2522_v30 = vld [vmem:[#allocation8 + $0x520] sm:$0xff] }
 0x14c   : > { %v2478_v31 = vld [vmem:[#allocation8 + $0x3c0] sm:$0xff] }
 0x14d   : > { %2211 = vmatpush2.bf16.msra.mxu0 %v5522_v38  ;;  %v2482_v38 = vld [vmem:[#allocation8 + $0x3e0] sm:$0xff] }
 0x14e   : > { %2264 = vmatpush2.bf16.msra.mxu1 %v5525_v39  ;;  %2212 = vmatprep.subr.bf16.mxu0 %v5530_v40  ;;  %v4971_v39 = vcombine.low %v2518_v29, %v2522_v30  ;;  %v4972_v40 = vcombine.high %v2518_v29, %v2522_v30 }
 0x14f   : > { %2265 = vmatprep.subr.bf16.mxu1 %v5533_v41  ;;  %v4811_v41 = vcombine.low %v2358_v23, %v2362_v24  ;;  %v2430_v23 = vld [vmem:[#allocation8 + $0x240] sm:$0xff] }
 0x150   : > { %v2434_v24 = vld [vmem:[#allocation8 + $0x260] sm:$0xff] }
 0x151   : > { %2213 = vmatpush2.bf16.msra.mxu0 %v5528_v44  ;;  %v4932_v44 = vcombine.high %v2478_v31, %v2482_v38  ;;  %v4884_v30 = vcombine.high %v2430_v23, %v2434_v24 }
 0x152   : > { %2266 = vmatpush2.bf16.msra.mxu1 %v5531_v45  ;;  %2214 = vmatprep.subr.bf16.mxu0 %v5536_v46  ;;  %v2510_v45 = vld [vmem:[#allocation8 + $0x4c0] sm:$0xff] }
 0x153   : > { %2267 = vmatprep.subr.bf16.mxu1 %v5539_v47  ;;  %v2514_v46 = vld [vmem:[#allocation8 + $0x4e0] sm:$0xff] }
 0x154   : > { %v2470_v47 = vld [vmem:[#allocation8 + $0x380] sm:$0xff] }
 0x155   : > { %2215 = vmatpush2.bf16.msra.mxu0 %v5534_v50  ;;  %v2474_v50 = vld [vmem:[#allocation8 + $0x3a0] sm:$0xff] }
 0x156   : > { %2268 = vmatpush2.bf16.msra.mxu1 %v5537_v52  ;;  %2216 = vmatprep.subr.bf16.mxu0 %v5542_v56  ;;  %v4963_v52 = vcombine.low %v2510_v45, %v2514_v46  ;;  %v4964_v56 = vcombine.high %v2510_v45, %v2514_v46 }
 0x157   : > { %2269 = vmatprep.subr.bf16.mxu1 %v5545_v57  ;;  %v4931_v57 = vcombine.low %v2478_v31, %v2482_v38  ;;  %v2590_v31 = vld [vmem:[#allocation8 + $0x740] sm:$0xff] }
 0x158   : > { %v2594_v38 = vld [vmem:[#allocation8 + $0x760] sm:$0xff] }
 0x159   : > { %2217 = vmatpush2.bf16.msra.mxu0 %v5540_v58  ;;  %v4924_v58 = vcombine.high %v2470_v47, %v2474_v50 }
 0x15a   : > { %2270 = vmatpush2.bf16.msra.mxu1 %v5543_v59  ;;  %2218 = vmatprep.subr.bf16.mxu0 %v5548_v60  ;;  %v2502_v59 = vld [vmem:[#allocation8 + $0x480] sm:$0xff] }
 0x15b   : > { %2271 = vmatprep.subr.bf16.mxu1 %v5551_v61  ;;  %v2506_v60 = vld [vmem:[#allocation8 + $0x4a0] sm:$0xff] }
 0x15c   : > { %v2462_v61 = vld [vmem:[#allocation8 + $0x340] sm:$0xff]  ;;  %v4955_v63 = vcombine.low %v2502_v59, %v2506_v60 }
 0x15d   : > { %2219 = vmatpush2.bf16.msra.mxu0 %v5546_v0  ;;  %v4956_v0 = vcombine.high %v2502_v59, %v2506_v60 }
 0x15e   : > { %2272 = vmatpush2.bf16.msra.mxu1 %v5549_v1  ;;  %3934 = vmatprep.subr.bf16.mxu0 %v4868_v2  ;;  %v4923_v1 = vcombine.low %v2470_v47, %v2474_v50  ;;  %v4916_v2 = vcombine.high %v2462_v61, %v2466_v62  ;;  %v4883_v47 = vcombine.low %v2430_v23, %v2434_v24 }
 0x15f   : > { %3987 = vmatprep.subr.bf16.mxu1 %v4996_v49  ;;  %v2610_v49 = vld [vmem:[#allocation8 + $0x7e0] sm:$0xff] }
 0x160   : > { %2221 = vmatmul.mubr.bf16.vlgmr.msra.gmra.mxu0 %v5943_v32  ;;  %v2382_v32 = vld [vmem:[#allocation8 + $0xc0] sm:$0xff] }
 0x161   : > { %2274 = vmatmul.mubr.bf16.vlgmr.msra.gmra.mxu1 %v5947_v36  ;;  %2230 = vmatprep.mubr.bf16.mxu0 %v5951_v42  ;;  %v2386_v36 = vld [vmem:[#allocation8 + $0xe0] sm:$0xff]  ;;  %v4843_v42 = vcombine.low %v2390_v34, %v2394_v55  ;;  %v4915_v34 = vcombine.low %v2462_v61, %v2466_v62  ;;  %v4908_v55 = vcombine.high %v2454_v9, %v2458_v6 }
 0x162   : > { %2283 = vmatprep.mubr.bf16.mxu1 %v5953_v43  ;;  %3935 = vmatpush1.bf16.msra.mxu0 %v4867_v5  ;;  %v4836_v43 = vcombine.high %v2382_v32, %v2386_v36  ;;  %v4835_v51 = vcombine.low %v2382_v32, %v2386_v36  ;;  %v5981_v5 = vpop.f32.mrf.mxu0 }
 0x163   : > { %3936 = vmatprep.subr.bf16.mxu0 %v4860_v8  ;;  %3988 = vmatpush1.bf16.msra.mxu1 %v4995_v13  ;;  %v5983_v8 = vpop.f32.mrf.mxu1  ;;  %v2606_v13 = vld [vmem:[#allocation8 + $0x7c0] sm:$0xff] }
 0x164   : > { %v5985_v32 = vpop.f32.mrf.mxu0  ;;  %v5059_v15 = vcombine.low %v2606_v13, %v2610_v49  ;;  %v5060_v16 = vcombine.high %v2606_v13, %v2610_v49  ;;  %v1958_v13 = vadd.f32 %v5983_v8, %v5981_v5 }
 0x165   : > { %v5987_v36 = vpop.f32.mrf.mxu1 }
 0x166   : > { %3937 = vmatpush1.bf16.msra.mxu0 %v4859_v53  ;;  %v4947_v53 = vcombine.low %v2494_v3, %v2498_v4 }
 0x167   : > { %3938 = vmatprep.subr.bf16.mxu0 %v4852_v33  ;;  %v4948_v33 = vcombine.high %v2494_v3, %v2498_v4 }
 0x168   : > { %2231 = vmatmul.mubr.bf16.gmra.mxu0 %v5959_v48  ;;  %v2534_v48 = vld [vmem:[#allocation8 + $0x580] sm:$0xff] }
 0x169   : > { %2284 = vmatmul.mubr.bf16.gmra.mxu1 %v5961_v54  ;;  %v2538_v54 = vld [vmem:[#allocation8 + $0x5a0] sm:$0xff] }
 0x16a   : > { %3939 = vmatpush1.bf16.msra.mxu0 %v4851_v7  ;;  %v4987_v17 = vcombine.low %v2534_v48, %v2538_v54  ;;  %v4988_v18 = vcombine.high %v2534_v48, %v2538_v54  ;;  %v2486_v7 = vld [vmem:[#allocation8 + $0x400] sm:$0xff] }
 0x16b   : > { %3940 = vmatprep.subr.bf16.mxu0 %v4844_v35  ;;  %v2490_v35 = vld [vmem:[#allocation8 + $0x420] sm:$0xff] }
 0x16c   : > { %3989 = vmatprep.subr.bf16.mxu1 %v4988_v18  ;;  %v4939_v37 = vcombine.low %v2486_v7, %v2490_v35  ;;  %v4940_v10 = vcombine.high %v2486_v7, %v2490_v35  ;;  %v2438_v48 = vld [vmem:[#allocation8 + $0x280] sm:$0xff] }
 0x16d   : > { %3990 = vmatpush1.bf16.msra.mxu1 %v4987_v17  ;;  %v2442_v54 = vld [vmem:[#allocation8 + $0x2a0] sm:$0xff] }
 0x16e   : > { %3941 = vmatpush1.bf16.msra.mxu0 %v4843_v42  ;;  %3991 = vmatprep.subr.bf16.mxu1 %v4980_v26  ;;  %v2446_v42 = vld [vmem:[#allocation8 + $0x2c0] sm:$0xff]  ;;  %v4892_v18 = vcombine.high %v2438_v48, %v2442_v54  ;;  %v4891_v29 = vcombine.low %v2438_v48, %v2442_v54 }
 0x16f   : > { %3942 = vmatprep.subr.bf16.mxu0 %v4836_v43  ;;  %v2450_v43 = vld [vmem:[#allocation8 + $0x2e0] sm:$0xff] }
 0x170   : > { %v4900_v12 = vcombine.high %v2446_v42, %v2450_v43  ;;  %v4899_v17 = vcombine.low %v2446_v42, %v2450_v43 }
 0x171   : > { %3992 = vmatpush1.bf16.msra.mxu1 %v4979_v25 }
 0x172   : > { %3943 = vmatpush1.bf16.msra.mxu0 %v4835_v51  ;;  %3993 = vmatprep.subr.bf16.mxu1 %v4972_v40  ;;  %v5989_v51 = vpop.f32.mrf.mxu0  ;;  %v2426_v40 = vld [vmem:[#allocation8 + $0x220] sm:$0xff] }
 0x173   : > { %3944 = vmatprep.subr.bf16.mxu0 %v4828_v14  ;;  %v5991_v14 = vpop.f32.mrf.mxu1 }
 0x174   : > { %v5993_v21 = vpop.f32.mrf.mxu0 }
 0x175   : > { %3994 = vmatpush1.bf16.msra.mxu1 %v4971_v39  ;;  %v5995_v22 = vpop.f32.mrf.mxu1  ;;  %v2422_v39 = vld [vmem:[#allocation8 + $0x200] sm:$0xff] }
 0x176   : > { %3945 = vmatpush1.bf16.msra.mxu0 %v4827_v19  ;;  %3995 = vmatprep.subr.bf16.mxu1 %v4964_v56  ;;  %v2598_v19 = vld [vmem:[#allocation8 + $0x780] sm:$0xff]  ;;  %v4876_v50 = vcombine.high %v2422_v39, %v2426_v40 }
 0x177   : > { %3946 = vmatprep.subr.bf16.mxu0 %v4820_v20  ;;  %v2602_v20 = vld [vmem:[#allocation8 + $0x7a0] sm:$0xff] }
 0x178   : > { %v5051_v25 = vcombine.low %v2598_v19, %v2602_v20  ;;  %v5052_v26 = vcombine.high %v2598_v19, %v2602_v20  ;;  %v2586_v56 = vld [vmem:[#allocation8 + $0x720] sm:$0xff] }
 0x179   : > { %3996 = vmatpush1.bf16.msra.mxu1 %v4963_v52  ;;  %v2582_v52 = vld [vmem:[#allocation8 + $0x700] sm:$0xff] }
 0x17a   : > { %3947 = vmatpush1.bf16.msra.mxu0 %v4819_v27  ;;  %3997 = vmatprep.subr.bf16.mxu1 %v4956_v0  ;;  %v5997_v27 = vpop.f32.mrf.mxu0  ;;  %v5035_v59 = vcombine.low %v2582_v52, %v2586_v56  ;;  %v5036_v60 = vcombine.high %v2582_v52, %v2586_v56  ;;  %v2554_v20 = vld [vmem:[#allocation8 + $0x620] sm:$0xff] }
 0x17b   : > { %3948 = vmatprep.subr.bf16.mxu0 %v4812_v28  ;;  %v5999_v28 = vpop.f32.mrf.mxu1 }
 0x17c   : > { %v6001_v45 = vpop.f32.mrf.mxu0  ;;  %v1968_v52 = vadd.f32 %v5999_v28, %v5997_v27 }
 0x17d   : > { %3998 = vmatpush1.bf16.msra.mxu1 %v4955_v63  ;;  %v6003_v46 = vpop.f32.mrf.mxu1  ;;  %v4875_v63 = vcombine.low %v2422_v39, %v2426_v40 }
 0x17e   : > { %3949 = vmatpush1.bf16.msra.mxu0 %v4811_v41  ;;  %3999 = vmatprep.subr.bf16.mxu1 %v4948_v33  ;;  %v5043_v41 = vcombine.low %v2590_v31, %v2594_v38  ;;  %v1918_v61 = vpop.f32.mrf.mxu0  ;;  %v2570_v33 = vld [vmem:[#allocation8 + $0x6a0] sm:$0xff]  ;;  %v1970_v39 = vadd.f32 %v6003_v46, %v6001_v45 }
 0x17f   : > { %3950 = vmatprep.subr.bf16.mxu0 %v4932_v44  ;;  %v5044_v44 = vcombine.high %v2590_v31, %v2594_v38  ;;  %v1971_v62 = vpop.f32.mrf.mxu1 }
 0x180   : > { %v1920_v9 = vpop.f32.mrf.mxu0  ;;  %v1972_v40 = vadd.f32 %v1971_v62, %v1918_v61 }
 0x181   : > { %4000 = vmatpush1.bf16.msra.mxu1 %v4947_v53  ;;  %v1973_v6 = vpop.f32.mrf.mxu1  ;;  %v2566_v53 = vld [vmem:[#allocation8 + $0x680] sm:$0xff] }
 0x182   : > { %3951 = vmatpush2.bf16.msra.mxu0 %v4931_v57  ;;  %4001 = vmatprep.subr.bf16.mxu1 %v4940_v10  ;;  %v6005_v57 = vld [vmem:[#allocation8 + $0x1c8] sm:$0xff]  ;;  %v5020_v7 = vcombine.high %v2566_v53, %v2570_v33  ;;  %v5019_v35 = vcombine.low %v2566_v53, %v2570_v33  ;;  %v1962_v10 = vadd.f32 %v5991_v14, %v5989_v51  ;;  %v2550_v14 = vld [vmem:[#allocation8 + $0x600] sm:$0xff] }
 0x183   : > { %3952 = vmatprep.subr.bf16.mxu0 %v4924_v58  ;;  %v6007_v58 = vld [vmem:[#allocation8 + $0x1e8] sm:$0xff]  ;;  %v5004_v8 = vcombine.high %v2550_v14, %v2554_v20  ;;  %v1974_v46 = vadd.f32 %v1973_v6, %v1920_v9 }
 0x184   : > { %v4870_v0 = vcombine.high %v6005_v57, %v6007_v58  ;;  %v2391_v33 = vld [vmem:[#allocation8 + $0x108] sm:$0xff] }
 0x185   : > { %4002 = vmatpush1.bf16.msra.mxu1 %v4939_v37  ;;  %v1960_v37 = vadd.f32 %v5987_v36, %v5985_v32 }
 0x186   : > { %3953 = vmatpush2.bf16.msra.mxu0 %v4923_v1  ;;  %4003 = vmatprep.subr.bf16.mxu1 %v5060_v16  ;;  %v2574_v1 = vld [vmem:[#allocation8 + $0x6c0] sm:$0xff] }
 0x187   : > { %3954 = vmatprep.subr.bf16.mxu0 %v4916_v2  ;;  %v2578_v2 = vld [vmem:[#allocation8 + $0x6e0] sm:$0xff] }
 0x188   : > { %v5027_v3 = vcombine.low %v2574_v1, %v2578_v2  ;;  %v5028_v4 = vcombine.high %v2574_v1, %v2578_v2 }
 0x189   : > { %4004 = vmatpush2.bf16.msra.mxu1 %v5059_v15  ;;  %v1964_v15 = vadd.f32 %v5995_v22, %v5993_v21  ;;  %v5003_v21 = vcombine.low %v2550_v14, %v2554_v20  ;;  %v2479_v14 = vld [vmem:[#allocation8 + $0x3c8] sm:$0xff] }
 0x18a   : > { %3955 = vmatpush2.bf16.msra.mxu0 %v4915_v34  ;;  %4005 = vmatprep.subr.bf16.mxu1 %v5052_v26  ;;  %v2483_v20 = vld [vmem:[#allocation8 + $0x3e8] sm:$0xff] }
 0x18b   : > { %3956 = vmatprep.subr.bf16.mxu0 %v4908_v55 }
 0x18d   : > { %4006 = vmatpush2.bf16.msra.mxu1 %v5051_v25 }
 0x18e   : > { %3957 = vmatpush2.bf16.msra.mxu0 %v4907_v11  ;;  %4007 = vmatprep.subr.bf16.mxu1 %v5044_v44  ;;  %v2558_v11 = vld [vmem:[#allocation8 + $0x640] sm:$0xff]  ;;  %v4869_v44 = vcombine.low %v6005_v57, %v6007_v58  ;;  %v2399_v57 = vld [vmem:[#allocation8 + $0x148] sm:$0xff] }
 0x18f   : > { %3958 = vmatprep.subr.bf16.mxu0 %v4900_v12  ;;  %v2562_v12 = vld [vmem:[#allocation8 + $0x660] sm:$0xff]  ;;  %v2403_v58 = vld [vmem:[#allocation8 + $0x168] sm:$0xff] }
 0x190   : > { %v5012_v54 = vcombine.high %v2558_v11, %v2562_v12  ;;  %v4854_v9 = vcombine.high %v2399_v57, %v2403_v58 }
 0x191   : > { %4008 = vmatpush2.bf16.msra.mxu1 %v5043_v41 }
 0x192   : > { %3959 = vmatpush2.bf16.msra.mxu0 %v4899_v17  ;;  %4009 = vmatprep.subr.bf16.mxu1 %v5036_v60 }
 0x193   : > { %3960 = vmatprep.subr.bf16.mxu0 %v4892_v18  ;;  %v5011_v18 = vcombine.low %v2558_v11, %v2562_v12 }
 0x195   : > { %4010 = vmatpush2.bf16.msra.mxu1 %v5035_v59 }
 0x196   : > { %3961 = vmatpush2.bf16.msra.mxu0 %v4891_v29  ;;  %4011 = vmatprep.subr.bf16.mxu1 %v5028_v4  ;;  %v2407_v29 = vld [vmem:[#allocation8 + $0x188] sm:$0xff] }
 0x197   : > { %3962 = vmatprep.subr.bf16.mxu0 %v4884_v30  ;;  %v2411_v30 = vld [vmem:[#allocation8 + $0x1a8] sm:$0xff] }
 0x199   : > { %4012 = vmatpush2.bf16.msra.mxu1 %v5027_v3  ;;  %v4861_v3 = vcombine.low %v2407_v29, %v2411_v30 }
 0x19a   : > { %3963 = vmatpush2.bf16.msra.mxu0 %v4883_v47  ;;  %4013 = vmatprep.subr.bf16.mxu1 %v5020_v7  ;;  %v6025_v47 = vld [vmem:[#allocation8 + $0x5c8] sm:$0xff] }
 0x19b   : > { %3964 = vmatprep.subr.bf16.mxu0 %v4876_v50  ;;  %v6027_v50 = vld [vmem:[#allocation8 + $0x5e8] sm:$0xff] }
 0x19c   : > { %v4998_v45 = vcombine.high %v6025_v47, %v6027_v50 }
 0x19d   : > { %4014 = vmatpush2.bf16.msra.mxu1 %v5019_v35  ;;  %v4853_v35 = vcombine.low %v2399_v57, %v2403_v58  ;;  %v2435_v57 = vld [vmem:[#allocation8 + $0x268] sm:$0xff] }
 0x19e   : > { %3965 = vmatpush2.bf16.msra.mxu0 %v4875_v63  ;;  %4015 = vmatprep.subr.bf16.mxu1 %v5012_v54  ;;  %v4862_v63 = vcombine.high %v2407_v29, %v2411_v30  ;;  %v2463_v29 = vld [vmem:[#allocation8 + $0x348] sm:$0xff] }
 0x19f   : > { %4040 = vmatprep.subr.bf16.mxu0 %v4870_v0  ;;  %v4997_v0 = vcombine.low %v6025_v47, %v6027_v50  ;;  %v2467_v30 = vld [vmem:[#allocation8 + $0x368] sm:$0xff] }
 0x1a0   : > { %v2010_v34 = vpop.f32.mrf.mxu0 }
 0x1a1   : > { %v2063_v55 = vpop.f32.mrf.mxu1  ;;  %v2011_v19 = vadd.f32 %v2010_v34, %v1958_v13  ;;  %4016 = vmatpush2.bf16.msra.mxu1 %v5011_v18  ;;  %v2395_v34 = vld [vmem:[#allocation8 + $0x128] sm:$0xff] }
 0x1a2   : > { %v2012_v42 = vpop.f32.mrf.mxu0  ;;  %4017 = vmatprep.subr.bf16.mxu1 %v5004_v8  ;;  %v4845_v11 = vcombine.low %v2391_v33, %v2395_v34  ;;  %v2375_v13 = vld [vmem:[#allocation8 + $0x88] sm:$0xff] }
 0x1a3   : > { %v2065_v43 = vpop.f32.mrf.mxu1  ;;  %v2013_v16 = vadd.f32 %v2012_v42, %v1960_v37  ;;  %v2064_v22 = vadd.f32 %v2063_v55, %v2011_v19  ;;  %v2383_v37 = vld [vmem:[#allocation8 + $0xc8] sm:$0xff] }
 0x1a4   : > { %v2014_v49 = vpop.f32.mrf.mxu0  ;;  %v2359_v19 = vld [vmem:[#allocation8 + $0x8] sm:$0xff] }
 0x1a5   : > { %v2067_v48 = vpop.f32.mrf.mxu1  ;;  %v2015_v17 = vadd.f32 %v2014_v49, %v1962_v10  ;;  %v2066_v25 = vadd.f32 %v2065_v43, %v2013_v16  ;;  %4018 = vmatpush2.bf16.msra.mxu1 %v5003_v21  ;;  %v4846_v43 = vcombine.high %v2391_v33, %v2395_v34  ;;  %v2387_v10 = vld [vmem:[#allocation8 + $0xe8] sm:$0xff]  ;;  %v2408_v33 = vld [vmem:[#allocation8 + $0x190] sm:$0xff] }
 0x1a6   : > { %v2016_v32 = vpop.f32.mrf.mxu0  ;;  %4093 = vmatprep.subr.bf16.mxu1 %v4998_v45  ;;  %v4838_v12 = vcombine.high %v2383_v37, %v2387_v10  ;;  %v2379_v49 = vld [vmem:[#allocation8 + $0xa8] sm:$0xff]  ;;  %v2412_v34 = vld [vmem:[#allocation8 + $0x1b0] sm:$0xff] }
 0x1a7   : > { %v2069_v36 = vpop.f32.mrf.mxu1  ;;  %v2017_v51 = vadd.f32 %v2016_v32, %v1964_v15  ;;  %v2068_v23 = vadd.f32 %v2067_v48, %v2015_v17  ;;  %v4837_v48 = vcombine.low %v2383_v37, %v2387_v10  ;;  %v4830_v54 = vcombine.high %v2375_v13, %v2379_v49  ;;  %v2367_v15 = vld [vmem:[#allocation8 + $0x48] sm:$0xff]  ;;  %v2404_v37 = vld [vmem:[#allocation8 + $0x170] sm:$0xff] }
 0x1a8   : > { %v2020_v24 = vpop.f32.mrf.mxu0  ;;  %v2371_v16 = vld [vmem:[#allocation8 + $0x68] sm:$0xff]  ;;  %v4829_v17 = vcombine.low %v2375_v13, %v2379_v49  ;;  %v4863_v10 = vcombine.low %v2408_v33, %v2412_v34  ;;  %v2396_v13 = vld [vmem:[#allocation8 + $0x130] sm:$0xff] }
 0x1a9   : > { %v2073_v5 = vpop.f32.mrf.mxu1  ;;  %v2070_v26 = vadd.f32 %v2069_v36, %v2017_v51  ;;  %v6031_v56 = vpack.c.bf16 %v2068_v23, %v2064_v22  ;;  %v2021_v1 = vadd.f32 %v2020_v24, %v1968_v52  ;;  %v4822_v18 = vcombine.high %v2367_v15, %v2371_v16  ;;  %v2363_v32 = vld [vmem:[#allocation8 + $0x28] sm:$0xff] }
 0x1aa   : > { %v2022_v31 = vpop.f32.mrf.mxu0  ;;  %v4821_v36 = vcombine.low %v2367_v15, %v2371_v16  ;;  %v4814_v51 = vcombine.high %v2359_v19, %v2363_v32  ;;  %v4813_v23 = vcombine.low %v2359_v19, %v2363_v32  ;;  %v4934_v24 = vcombine.high %v2479_v14, %v2483_v20  ;;  %v2475_v8 = vld [vmem:[#allocation8 + $0x3a8] sm:$0xff]  ;;  %v2388_v15 = vld [vmem:[#allocation8 + $0xf0] sm:$0xff] }
 0x1ab   : > { %v2075_v38 = vpop.f32.mrf.mxu1  ;;  %v6021_v41 = vpack.c.bf16 %v2070_v26, %v2066_v25  ;;  %v2023_v61 = vadd.f32 %v2022_v31, %v1970_v39  ;;  %v2074_v55 = vadd.f32 %v2073_v5, %v2021_v1  ;;  %v2471_v5 = vld [vmem:[#allocation8 + $0x388] sm:$0xff]  ;;  %v4933_v25 = vcombine.low %v2479_v14, %v2483_v20  ;;  %v2380_v19 = vld [vmem:[#allocation8 + $0xb0] sm:$0xff] }
 0x1ac   : > { %v2024_v59 = vpop.f32.mrf.mxu0  ;;  %v4926_v26 = vcombine.high %v2471_v5, %v2475_v8  ;;  %v4925_v21 = vcombine.low %v2471_v5, %v2475_v8  ;;  %v4918_v22 = vcombine.high %v2463_v29, %v2467_v30  ;;  %v2455_v31 = vld [vmem:[#allocation8 + $0x308] sm:$0xff]  ;;  %v4917_v39 = vcombine.low %v2463_v29, %v2467_v30  ;;  %v2372_v14 = vld [vmem:[#allocation8 + $0x70] sm:$0xff] }
 0x1ad   : > { %v2077_v60 = vpop.f32.mrf.mxu1  ;;  %v2025_v62 = vadd.f32 %v2024_v59, %v1972_v40  ;;  %3966 = vmatprep.mubr.bf16.mxu0 %v6021_v41  ;;  %v2076_v6 = vadd.f32 %v2075_v38, %v2023_v61  ;;  %v2459_v38 = vld [vmem:[#allocation8 + $0x328] sm:$0xff]  ;;  %v2364_v5 = vld [vmem:[#allocation8 + $0x30] sm:$0xff] }
 0x1ae   : > { %v2026_v27 = vpop.f32.mrf.mxu0  ;;  %3967 = vmatmul.mubr.bf16.vlgmr.msra.gmra.mxu0 %v6031_v56  ;;  %v4910_v40 = vcombine.high %v2455_v31, %v2459_v38  ;;  %v2451_v52 = vld [vmem:[#allocation8 + $0x2e8] sm:$0xff]  ;;  %v4909_v59 = vcombine.low %v2455_v31, %v2459_v38  ;;  %v2480_v30 = vld [vmem:[#allocation8 + $0x3d0] sm:$0xff] }
 0x1af   : > { %v2079_v28 = vpop.f32.mrf.mxu1  ;;  %v2027_v2 = vadd.f32 %v2026_v27, %v1974_v46  ;;  %4041 = vmatpush1.bf16.msra.mxu0 %v4869_v44  ;;  %v2078_v4 = vadd.f32 %v2077_v60, %v2025_v62  ;;  %v2447_v44 = vld [vmem:[#allocation8 + $0x2c8] sm:$0xff] }
 0x1b0   : > { %4042 = vmatprep.subr.bf16.mxu0 %v4862_v63  ;;  %v4902_v60 = vcombine.high %v2447_v44, %v2451_v52  ;;  %v2439_v63 = vld [vmem:[#allocation8 + $0x288] sm:$0xff]  ;;  %v4901_v46 = vcombine.low %v2447_v44, %v2451_v52  ;;  %v2476_v44 = vld [vmem:[#allocation8 + $0x3b0] sm:$0xff] }
 0x1b1   : > { %v2080_v53 = vadd.f32 %v2079_v28, %v2027_v2  ;;  %v6041_v42 = vpack.c.bf16 %v2078_v4, %v2074_v55  ;;  %v2443_v45 = vld [vmem:[#allocation8 + $0x2a8] sm:$0xff]  ;;  %v2416_v4 = vld [vmem:[#allocation8 + $0x1d0] sm:$0xff] }
 0x1b2   : > { %v4894_v61 = vcombine.high %v2439_v63, %v2443_v45  ;;  %v2431_v62 = vld [vmem:[#allocation8 + $0x248] sm:$0xff]  ;;  %v4893_v58 = vcombine.low %v2439_v63, %v2443_v45  ;;  %v2464_v45 = vld [vmem:[#allocation8 + $0x350] sm:$0xff] }
 0x1b3   : > { %v6039_v7 = vpack.c.bf16 %v2080_v53, %v2076_v6  ;;  %4043 = vmatpush1.bf16.msra.mxu0 %v4861_v3  ;;  %v4886_v1 = vcombine.high %v2431_v62, %v2435_v57  ;;  %v2423_v27 = vld [vmem:[#allocation8 + $0x208] sm:$0xff]  ;;  %v4885_v2 = vcombine.low %v2431_v62, %v2435_v57 }
 0x1b4   : > { %4044 = vmatprep.subr.bf16.mxu0 %v4854_v9  ;;  %v2427_v28 = vld [vmem:[#allocation8 + $0x228] sm:$0xff]  ;;  %v2420_v9 = vld [vmem:[#allocation8 + $0x1f0] sm:$0xff] }
 0x1b5   : > { %3976 = vmatprep.mubr.bf16.mxu0 %v6039_v7  ;;  %v4878_v3 = vcombine.high %v2423_v27, %v2427_v28  ;;  %v4877_v6 = vcombine.low %v2423_v27, %v2427_v28  ;;  %v4872_v53 = vcombine.high %v2416_v4, %v2420_v9  ;;  %v4871_v55 = vcombine.low %v2416_v4, %v2420_v9  ;;  %v2460_v27 = vld [vmem:[#allocation8 + $0x330] sm:$0xff] }
 0x1b6   : > { %3977 = vmatmul.mubr.bf16.gmra.mxu0 %v6041_v42  ;;  %v2448_v9 = vld [vmem:[#allocation8 + $0x2d0] sm:$0xff] }
 0x1b7   : > { %4045 = vmatpush1.bf16.msra.mxu0 %v4853_v35  ;;  %4072 = vmatprep.mubr.bf16.mxu0 %v6021_v41  ;;  %v4864_v35 = vcombine.high %v2408_v33, %v2412_v34 }
 0x1b8   : > { %4046 = vmatprep.subr.bf16.mxu0 %v4846_v43  ;;  %v2400_v43 = vld [vmem:[#allocation8 + $0x150] sm:$0xff] }
 0x1b9   : > { %v4855_v49 = vcombine.low %v2400_v43, %v2404_v37 }
 0x1bb   : > { %4047 = vmatpush1.bf16.msra.mxu0 %v4845_v11  ;;  %v4856_v11 = vcombine.high %v2400_v43, %v2404_v37  ;;  %v2444_v43 = vld [vmem:[#allocation8 + $0x2b0] sm:$0xff] }
 0x1bc   : > { %4048 = vmatprep.subr.bf16.mxu0 %v4838_v12  ;;  %v2392_v12 = vld [vmem:[#allocation8 + $0x110] sm:$0xff] }
 0x1bd   : > { %v4847_v16 = vcombine.low %v2392_v12, %v2396_v13 }
 0x1bf   : > { %4049 = vmatpush1.bf16.msra.mxu0 %v4837_v48  ;;  %v4848_v48 = vcombine.high %v2392_v12, %v2396_v13  ;;  %v2432_v13 = vld [vmem:[#allocation8 + $0x250] sm:$0xff] }
 0x1c0   : > { %4050 = vmatprep.subr.bf16.mxu0 %v4830_v54  ;;  %v2384_v54 = vld [vmem:[#allocation8 + $0xd0] sm:$0xff] }
 0x1c1   : > { %v4839_v32 = vcombine.low %v2384_v54, %v2388_v15 }
 0x1c3   : > { %4051 = vmatpush1.bf16.msra.mxu0 %v4829_v17  ;;  %v4840_v17 = vcombine.high %v2384_v54, %v2388_v15 }
 0x1c4   : > { %4052 = vmatprep.subr.bf16.mxu0 %v4822_v18  ;;  %v2376_v18 = vld [vmem:[#allocation8 + $0x90] sm:$0xff] }
 0x1c5   : > { %v4831_v20 = vcombine.low %v2376_v18, %v2380_v19 }
 0x1c7   : > { %4053 = vmatpush1.bf16.msra.mxu0 %v4821_v36  ;;  %v4832_v36 = vcombine.high %v2376_v18, %v2380_v19  ;;  %v2424_v19 = vld [vmem:[#allocation8 + $0x210] sm:$0xff] }
 0x1c8   : > { %4054 = vmatprep.subr.bf16.mxu0 %v4814_v51  ;;  %v2368_v51 = vld [vmem:[#allocation8 + $0x50] sm:$0xff] }
 0x1c9   : > { %v4823_v8 = vcombine.low %v2368_v51, %v2372_v14 }
 0x1cb   : > { %4055 = vmatpush1.bf16.msra.mxu0 %v4813_v23  ;;  %v4824_v23 = vcombine.high %v2368_v51, %v2372_v14 }
 0x1cc   : > { %4056 = vmatprep.subr.bf16.mxu0 %v4934_v24  ;;  %v2360_v24 = vld [vmem:[#allocation8 + $0x10] sm:$0xff] }
 0x1cd   : > { %v4816_v29 = vcombine.high %v2360_v24, %v2364_v5 }
 0x1cf   : > { %4057 = vmatpush2.bf16.msra.mxu0 %v4933_v25 }
 0x1d0   : > { %4058 = vmatprep.subr.bf16.mxu0 %v4926_v26 }
 0x1d3   : > { %4059 = vmatpush2.bf16.msra.mxu0 %v4925_v21  ;;  %v2484_v21 = vld [vmem:[#allocation8 + $0x3f0] sm:$0xff] }
 0x1d4   : > { %4060 = vmatprep.subr.bf16.mxu0 %v4918_v22  ;;  %v4815_v22 = vcombine.low %v2360_v24, %v2364_v5  ;;  %v4935_v52 = vcombine.low %v2480_v30, %v2484_v21 }
 0x1d7   : > { %4061 = vmatpush2.bf16.msra.mxu0 %v4917_v39  ;;  %v4936_v39 = vcombine.high %v2480_v30, %v2484_v21 }
 0x1d8   : > { %4062 = vmatprep.subr.bf16.mxu0 %v4910_v40  ;;  %v2472_v40 = vld [vmem:[#allocation8 + $0x390] sm:$0xff] }
 0x1d9   : > { %v4928_v63 = vcombine.high %v2472_v40, %v2476_v44 }
 0x1db   : > { %4063 = vmatpush2.bf16.msra.mxu0 %v4909_v59 }
 0x1dc   : > { %4064 = vmatprep.subr.bf16.mxu0 %v4902_v60 }
 0x1df   : > { %4065 = vmatpush2.bf16.msra.mxu0 %v4901_v46  ;;  %v2468_v46 = vld [vmem:[#allocation8 + $0x370] sm:$0xff] }
 0x1e0   : > { %4066 = vmatprep.subr.bf16.mxu0 %v4894_v61  ;;  %v6050_v25 = vpop.f32.mrf.mxu0  ;;  %v4927_v61 = vcombine.low %v2472_v40, %v2476_v44  ;;  %v2421_v40 = vld [vmem:[#allocation8 + $0x1f8] sm:$0xff] }
 0x1e1   : > { %v6052_v26 = vpop.f32.mrf.mxu1 }
 0x1e2   : > { %v2118_v31 = vpop.f32.mrf.mxu0  ;;  %v2170_v24 = vadd.f32 %v6052_v26, %v6050_v25 }
 0x1e3   : > { %4067 = vmatpush2.bf16.msra.mxu0 %v4893_v58  ;;  %v2171_v38 = vpop.f32.mrf.mxu1  ;;  %v4920_v58 = vcombine.high %v2464_v45, %v2468_v46 }
 0x1e4   : > { %4068 = vmatprep.subr.bf16.mxu0 %v4886_v1  ;;  %v2120_v59 = vpop.f32.mrf.mxu0  ;;  %v2456_v1 = vld [vmem:[#allocation8 + $0x310] sm:$0xff]  ;;  %v2172_v14 = vadd.f32 %v2171_v38, %v2118_v31 }
 0x1e5   : > { %v2173_v60 = vpop.f32.mrf.mxu1  ;;  %v4912_v4 = vcombine.high %v2456_v1, %v2460_v27  ;;  %v4911_v34 = vcombine.low %v2456_v1, %v2460_v27  ;;  %v2409_v27 = vld [vmem:[#allocation8 + $0x198] sm:$0xff] }
 0x1e6   : > { %v2122_v62 = vpop.f32.mrf.mxu0 }
 0x1e7   : > { %4069 = vmatpush2.bf16.msra.mxu0 %v4885_v2  ;;  %v2175_v57 = vpop.f32.mrf.mxu1 }
 0x1e8   : > { %4070 = vmatprep.subr.bf16.mxu0 %v4878_v3  ;;  %v6054_v28 = vpop.f32.mrf.mxu0  ;;  %v4919_v3 = vcombine.low %v2464_v45, %v2468_v46  ;;  %v2176_v30 = vadd.f32 %v2175_v57, %v2122_v62 }
 0x1e9   : > { %v6056_v2 = vpop.f32.mrf.mxu1 }
 0x1eb   : > { %4071 = vmatpush2.bf16.msra.mxu0 %v4877_v6  ;;  %v2452_v6 = vld [vmem:[#allocation8 + $0x2f0] sm:$0xff]  ;;  %v2181_v33 = vpop.f32.mrf.mxu1 }
 0x1ec   : > { %4146 = vmatprep.subr.bf16.mxu0 %v4872_v53  ;;  %v2128_v53 = vpop.f32.mrf.mxu0 }
 0x1ee   : > { %4073 = vmatmul.mubr.bf16.vlgmr.msra.gmra.mxu0 %v6031_v56  ;;  %v2130_v37 = vpop.f32.mrf.mxu0 }
 0x1ef   : > { %4082 = vmatprep.mubr.bf16.mxu0 %v6039_v7  ;;  %4147 = vmatpush1.bf16.msra.mxu0 %v4871_v55  ;;  %v4904_v55 = vcombine.high %v2448_v9, %v2452_v6 }
 0x1f0   : > { %4148 = vmatprep.subr.bf16.mxu0 %v4864_v35  ;;  %v2440_v35 = vld [vmem:[#allocation8 + $0x290] sm:$0xff] }
 0x1f1   : > { %v4896_v12 = vcombine.high %v2440_v35, %v2444_v43  ;;  %v4895_v15 = vcombine.low %v2440_v35, %v2444_v43 }
 0x1f3   : > { %4149 = vmatpush1.bf16.msra.mxu0 %v4863_v10  ;;  %v2183_v10 = vpop.f32.mrf.mxu1 }
 0x1f4   : > { %4150 = vmatprep.subr.bf16.mxu0 %v4856_v11  ;;  %v4903_v11 = vcombine.low %v2448_v9, %v2452_v6  ;;  %v2184_v9 = vadd.f32 %v2183_v10, %v2130_v37  ;;  %v2531_v37 = vld [vmem:[#allocation8 + $0x568] sm:$0xff] }
 0x1f5   : > { %v2185_v54 = vpop.f32.mrf.mxu1 }
 0x1f6   : > { %4083 = vmatmul.mubr.bf16.gmra.mxu0 %v6041_v42 }
 0x1f7   : > { %4151 = vmatpush1.bf16.msra.mxu0 %v4855_v49  ;;  %4178 = vmatprep.mubr.bf16.mxu0 %v6021_v41  ;;  %v2436_v49 = vld [vmem:[#allocation8 + $0x270] sm:$0xff] }
 0x1f8   : > { %4152 = vmatprep.subr.bf16.mxu0 %v4848_v48  ;;  %v2132_v48 = vpop.f32.mrf.mxu0  ;;  %v4888_v18 = vcombine.high %v2432_v13, %v2436_v49 }
 0x1fb   : > { %4153 = vmatpush1.bf16.msra.mxu0 %v4847_v16 }
 0x1fc   : > { %4154 = vmatprep.subr.bf16.mxu0 %v4840_v17 }
 0x1ff   : > { %4155 = vmatpush1.bf16.msra.mxu0 %v4839_v32  ;;  %v2428_v32 = vld [vmem:[#allocation8 + $0x230] sm:$0xff] }
 0x200   : > { %4156 = vmatprep.subr.bf16.mxu0 %v4832_v36  ;;  %v4879_v31 = vcombine.low %v2424_v19, %v2428_v32 }
 0x203   : > { %4157 = vmatpush1.bf16.msra.mxu0 %v4831_v20  ;;  %v2174_v20 = vadd.f32 %v2173_v60, %v2120_v59 }
 0x204   : > { %4158 = vmatprep.subr.bf16.mxu0 %v4824_v23  ;;  %v4887_v23 = vcombine.low %v2432_v13, %v2436_v49  ;;  %v2186_v13 = vadd.f32 %v2185_v54, %v2132_v48 }
 0x207   : > { %4159 = vmatpush1.bf16.msra.mxu0 %v4823_v8 }
 0x208   : > { %4160 = vmatprep.subr.bf16.mxu0 %v4816_v29  ;;  %v4880_v29 = vcombine.high %v2424_v19, %v2428_v32 }
 0x20b   : > { %4161 = vmatpush1.bf16.msra.mxu0 %v4815_v22 }
 0x20c   : > { %4162 = vmatprep.subr.bf16.mxu0 %v4936_v39  ;;  %v2417_v39 = vld [vmem:[#allocation8 + $0x1d8] sm:$0xff] }
 0x20d   : > { %v4874_v25 = vcombine.high %v2417_v39, %v2421_v40  ;;  %v4873_v43 = vcombine.low %v2417_v39, %v2421_v40  ;;  %v2515_v39 = vld [vmem:[#allocation8 + $0x4e8] sm:$0xff]  ;;  %v2385_v40 = vld [vmem:[#allocation8 + $0xd8] sm:$0xff] }
 0x20f   : > { %4163 = vmatpush2.bf16.msra.mxu0 %v4935_v52 }
 0x210   : > { %4164 = vmatprep.subr.bf16.mxu0 %v4928_v63 }
 0x213   : > { %4165 = vmatpush2.bf16.msra.mxu0 %v4927_v61  ;;  %v2535_v61 = vld [vmem:[#allocation8 + $0x588] sm:$0xff] }
 0x214   : > { %4166 = vmatprep.subr.bf16.mxu0 %v4920_v58  ;;  %v2539_v58 = vld [vmem:[#allocation8 + $0x5a8] sm:$0xff] }
 0x215   : > { %v4989_v48 = vcombine.low %v2535_v61, %v2539_v58 }
 0x217   : > { %4167 = vmatpush2.bf16.msra.mxu0 %v4919_v3  ;;  %v2413_v3 = vld [vmem:[#allocation8 + $0x1b8] sm:$0xff] }
 0x218   : > { %4168 = vmatprep.subr.bf16.mxu0 %v4912_v4  ;;  %v2182_v4 = vadd.f32 %v2181_v33, %v2128_v53  ;;  %v4866_v53 = vcombine.high %v2409_v27, %v2413_v3  ;;  %v2527_v33 = vld [vmem:[#allocation8 + $0x548] sm:$0xff]  ;;  %v4865_v19 = vcombine.low %v2409_v27, %v2413_v3 }
 0x219   : > { %v4982_v32 = vcombine.high %v2527_v33, %v2531_v37  ;;  %v4981_v47 = vcombine.low %v2527_v33, %v2531_v37  ;;  %v2611_v33 = vld [vmem:[#allocation8 + $0x7e8] sm:$0xff]  ;;  %v2481_v37 = vld [vmem:[#allocation8 + $0x3d8] sm:$0xff] }
 0x21b   : > { %4169 = vmatpush2.bf16.msra.mxu0 %v4911_v34  ;;  %v2180_v34 = vadd.f32 %v6056_v2, %v6054_v28  ;;  %v2401_v2 = vld [vmem:[#allocation8 + $0x158] sm:$0xff] }
 0x21c   : > { %4170 = vmatprep.subr.bf16.mxu0 %v4904_v55 }
 0x21f   : > { %4171 = vmatpush2.bf16.msra.mxu0 %v4903_v11 }
 0x220   : > { %v2222_v16 = vpop.f32.mrf.mxu0  ;;  %4172 = vmatprep.subr.bf16.mxu0 %v4896_v12  ;;  %v4990_v12 = vcombine.high %v2535_v61, %v2539_v58  ;;  %v2495_v58 = vld [vmem:[#allocation8 + $0x448] sm:$0xff] }
 0x221   : > { %v2275_v17 = vpop.f32.mrf.mxu1  ;;  %v2223_v44 = vadd.f32 %v2222_v16, %v2170_v24  ;;  %v2523_v24 = vld [vmem:[#allocation8 + $0x528] sm:$0xff] }
 0x222   : > { %v2224_v36 = vpop.f32.mrf.mxu0 }
 0x223   : > { %v2277_v51 = vpop.f32.mrf.mxu1  ;;  %4173 = vmatpush2.bf16.msra.mxu0 %v4895_v15  ;;  %v2225_v21 = vadd.f32 %v2224_v36, %v2172_v14  ;;  %v2276_v62 = vadd.f32 %v2275_v17, %v2223_v44  ;;  %v2405_v17 = vld [vmem:[#allocation8 + $0x178] sm:$0xff] }
 0x224   : > { %v2226_v5 = vpop.f32.mrf.mxu0  ;;  %4174 = vmatprep.subr.bf16.mxu0 %v4888_v18  ;;  %v4858_v14 = vcombine.high %v2401_v2, %v2405_v17  ;;  %v2389_v44 = vld [vmem:[#allocation8 + $0xf8] sm:$0xff] }
 0x225   : > { %v2279_v8 = vpop.f32.mrf.mxu1  ;;  %v2227_v22 = vadd.f32 %v2226_v5, %v2174_v20  ;;  %v2278_v26 = vadd.f32 %v2277_v51, %v2225_v21  ;;  %v2519_v20 = vld [vmem:[#allocation8 + $0x508] sm:$0xff]  ;;  %v2393_v5 = vld [vmem:[#allocation8 + $0x118] sm:$0xff] }
 0x226   : > { %v2228_v52 = vpop.f32.mrf.mxu0 }
 0x227   : > { %v2281_v63 = vpop.f32.mrf.mxu1  ;;  %v2229_v45 = vadd.f32 %v2228_v52, %v2176_v30  ;;  %4175 = vmatpush2.bf16.msra.mxu0 %v4887_v23  ;;  %v2280_v38 = vadd.f32 %v2279_v8, %v2227_v22  ;;  %v2397_v8 = vld [vmem:[#allocation8 + $0x138] sm:$0xff]  ;;  %v4974_v30 = vcombine.high %v2519_v20, %v2523_v24  ;;  %v2511_v22 = vld [vmem:[#allocation8 + $0x4c8] sm:$0xff]  ;;  %v4973_v52 = vcombine.low %v2519_v20, %v2523_v24 }
 0x228   : > { %v2232_v59 = vpop.f32.mrf.mxu0  ;;  %4176 = vmatprep.subr.bf16.mxu0 %v4880_v29  ;;  %v4850_v21 = vcombine.high %v2393_v5, %v2397_v8  ;;  %v2591_v20 = vld [vmem:[#allocation8 + $0x748] sm:$0xff]  ;;  %v2465_v24 = vld [vmem:[#allocation8 + $0x358] sm:$0xff] }
 0x229   : > { %v2285_v60 = vpop.f32.mrf.mxu1  ;;  %v2282_v46 = vadd.f32 %v2281_v63, %v2229_v45  ;;  %v6064_v55 = vpack.c.bf16 %v2280_v38, %v2276_v62  ;;  %v2233_v10 = vadd.f32 %v2232_v59, %v2180_v34  ;;  %v4849_v63 = vcombine.low %v2393_v5, %v2397_v8  ;;  %v2503_v38 = vld [vmem:[#allocation8 + $0x488] sm:$0xff]  ;;  %v2469_v5 = vld [vmem:[#allocation8 + $0x378] sm:$0xff] }
 0x22a   : > { %v2234_v57 = vpop.f32.mrf.mxu0  ;;  %v4966_v45 = vcombine.high %v2511_v22, %v2515_v39  ;;  %v2507_v59 = vld [vmem:[#allocation8 + $0x4a8] sm:$0xff] }
 0x22b   : > { %v2287_v1 = vpop.f32.mrf.mxu1  ;;  %v6060_v6 = vpack.c.bf16 %v2282_v46, %v2278_v26  ;;  %4177 = vmatpush2.bf16.msra.mxu0 %v4879_v31  ;;  %v2235_v49 = vadd.f32 %v2234_v57, %v2182_v4  ;;  %v2286_v23 = vadd.f32 %v2285_v60, %v2233_v10  ;;  %v4842_v31 = vcombine.high %v2385_v40, %v2389_v44  ;;  %v2377_v60 = vld [vmem:[#allocation8 + $0x98] sm:$0xff]  ;;  %v2499_v62 = vld [vmem:[#allocation8 + $0x468] sm:$0xff] }
 0x22c   : > { %v2236_v35 = vpop.f32.mrf.mxu0  ;;  %4252 = vmatprep.subr.bf16.mxu0 %v4874_v25  ;;  %v2381_v25 = vld [vmem:[#allocation8 + $0xb8] sm:$0xff]  ;;  %v4965_v26 = vcombine.low %v2511_v22, %v2515_v39  ;;  %v4841_v46 = vcombine.low %v2385_v40, %v2389_v44  ;;  %v4958_v61 = vcombine.high %v2503_v38, %v2507_v59  ;;  %v4957_v27 = vcombine.low %v2503_v38, %v2507_v59  ;;  %v2487_v34 = vld [vmem:[#allocation8 + $0x408] sm:$0xff] }
 0x22d   : > { %v2289_v11 = vpop.f32.mrf.mxu1  ;;  %v2237_v15 = vadd.f32 %v2236_v35, %v2184_v9  ;;  %4019 = vmatprep.mubr.bf16.mxu1 %v6060_v6  ;;  %v2288_v36 = vadd.f32 %v2287_v1, %v2235_v49  ;;  %v2369_v57 = vld [vmem:[#allocation8 + $0x58] sm:$0xff]  ;;  %v4833_v3 = vcombine.low %v2377_v60, %v2381_v25  ;;  %v4950_v4 = vcombine.high %v2495_v58, %v2499_v62  ;;  %v2491_v35 = vld [vmem:[#allocation8 + $0x428] sm:$0xff] }
 0x22e   : > { %4179 = vmatmul.mubr.bf16.vlgmr.msra.gmra.mxu0 %v6031_v56  ;;  %v2238_v16 = vpop.f32.mrf.mxu0  ;;  %4020 = vmatmul.mubr.bf16.vlgmr.msra.gmra.mxu1 %v6064_v55  ;;  %v2373_v1 = vld [vmem:[#allocation8 + $0x78] sm:$0xff]  ;;  %v4942_v49 = vcombine.high %v2487_v34, %v2491_v35  ;;  %v2587_v22 = vld [vmem:[#allocation8 + $0x728] sm:$0xff] }
 0x22f   : > { %v2291_v28 = vpop.f32.mrf.mxu1  ;;  %v2239_v18 = vadd.f32 %v2238_v16, %v2186_v13  ;;  %4094 = vmatpush1.bf16.msra.mxu1 %v4997_v0  ;;  %4188 = vmatprep.mubr.bf16.mxu0 %v6039_v7  ;;  %v2290_v54 = vadd.f32 %v2289_v11, %v2237_v15  ;;  %v4857_v0 = vcombine.low %v2401_v2, %v2405_v17  ;;  %v2365_v11 = vld [vmem:[#allocation8 + $0x38] sm:$0xff]  ;;  %v2579_v38 = vld [vmem:[#allocation8 + $0x6e8] sm:$0xff] }
 0x230   : > { %4253 = vmatpush1.bf16.msra.mxu0 %v4873_v43  ;;  %4095 = vmatprep.subr.bf16.mxu1 %v4990_v12  ;;  %v4826_v9 = vcombine.high %v2369_v57, %v2373_v1  ;;  %v2361_v43 = vld [vmem:[#allocation8 + $0x18] sm:$0xff]  ;;  %v4949_v12 = vcombine.low %v2495_v58, %v2499_v62  ;;  %v4825_v13 = vcombine.low %v2369_v57, %v2373_v1  ;;  %v2571_v58 = vld [vmem:[#allocation8 + $0x6a8] sm:$0xff] }
 0x231   : > { %v2292_v51 = vadd.f32 %v2291_v28, %v2239_v18  ;;  %4254 = vmatprep.subr.bf16.mxu0 %v4866_v53  ;;  %v6075_v50 = vpack.c.bf16 %v2290_v54, %v2286_v23  ;;  %v4818_v15 = vcombine.high %v2361_v43, %v2365_v11  ;;  %v2607_v53 = vld [vmem:[#allocation8 + $0x7c8] sm:$0xff]  ;;  %v2485_v10 = vld [vmem:[#allocation8 + $0x3f8] sm:$0xff]  ;;  %v4941_v16 = vcombine.low %v2487_v34, %v2491_v35 }
 0x232   : > { %v4817_v28 = vcombine.low %v2361_v43, %v2365_v11  ;;  %v5062_v2 = vcombine.high %v2607_v53, %v2611_v33  ;;  %v4938_v17 = vcombine.high %v2481_v37, %v2485_v10  ;;  %v2599_v18 = vld [vmem:[#allocation8 + $0x788] sm:$0xff]  ;;  %v2473_v54 = vld [vmem:[#allocation8 + $0x398] sm:$0xff] }
 0x233   : > { %v6073_v29 = vpack.c.bf16 %v2292_v51, %v2288_v36  ;;  %4096 = vmatpush1.bf16.msra.mxu1 %v4989_v48  ;;  %v2603_v48 = vld [vmem:[#allocation8 + $0x7a8] sm:$0xff]  ;;  %v4937_v36 = vcombine.low %v2481_v37, %v2485_v10  ;;  %v2457_v39 = vld [vmem:[#allocation8 + $0x318] sm:$0xff] }
 0x234   : > { %4255 = vmatpush1.bf16.msra.mxu0 %v4865_v19  ;;  %4097 = vmatprep.subr.bf16.mxu1 %v4982_v32  ;;  %v2477_v19 = vld [vmem:[#allocation8 + $0x3b8] sm:$0xff]  ;;  %v5061_v32 = vcombine.low %v2607_v53, %v2611_v33  ;;  %v5054_v51 = vcombine.high %v2599_v18, %v2603_v48  ;;  %v2595_v23 = vld [vmem:[#allocation8 + $0x768] sm:$0xff]  ;;  %v5053_v8 = vcombine.low %v2599_v18, %v2603_v48  ;;  %v2548_v18 = vld [vmem:[#allocation8 + $0x5f0] sm:$0xff] }
 0x235   : > { %4029 = vmatprep.mubr.bf16.mxu1 %v6073_v29  ;;  %4256 = vmatprep.subr.bf16.mxu0 %v4858_v14  ;;  %v4930_v14 = vcombine.high %v2473_v54, %v2477_v19  ;;  %v2461_v40 = vld [vmem:[#allocation8 + $0x338] sm:$0xff]  ;;  %v5045_v44 = vcombine.low %v2591_v20, %v2595_v23  ;;  %v2563_v34 = vld [vmem:[#allocation8 + $0x668] sm:$0xff] }
 0x236   : > { %4189 = vmatmul.mubr.bf16.gmra.mxu0 %v6041_v42  ;;  %4030 = vmatmul.mubr.bf16.gmra.mxu1 %v6075_v50  ;;  %v2449_v59 = vld [vmem:[#allocation8 + $0x2d8] sm:$0xff]  ;;  %v2555_v53 = vld [vmem:[#allocation8 + $0x628] sm:$0xff] }
 0x237   : > { %4098 = vmatpush1.bf16.msra.mxu1 %v4981_v47  ;;  %4284 = vmatprep.mubr.bf16.mxu0 %v6021_v41  ;;  %v4834_v41 = vcombine.high %v2377_v60, %v2381_v25  ;;  %v4929_v47 = vcombine.low %v2473_v54, %v2477_v19  ;;  %v2453_v60 = vld [vmem:[#allocation8 + $0x2f8] sm:$0xff] }
 0x238   : > { %4257 = vmatpush1.bf16.msra.mxu0 %v4857_v0  ;;  %4125 = vmatprep.mubr.bf16.mxu1 %v6060_v6  ;;  %v5046_v0 = vcombine.high %v2591_v20, %v2595_v23  ;;  %v2441_v62 = vld [vmem:[#allocation8 + $0x298] sm:$0xff]  ;;  %v2528_v20 = vld [vmem:[#allocation8 + $0x550] sm:$0xff] }
 0x239   : > { %4099 = vmatprep.subr.bf16.mxu1 %v4974_v30  ;;  %4258 = vmatprep.subr.bf16.mxu0 %v4850_v21  ;;  %v4922_v30 = vcombine.high %v2465_v24, %v2469_v5  ;;  %v2583_v21 = vld [vmem:[#allocation8 + $0x708] sm:$0xff]  ;;  %v2445_v57 = vld [vmem:[#allocation8 + $0x2b8] sm:$0xff]  ;;  %v2532_v23 = vld [vmem:[#allocation8 + $0x570] sm:$0xff] }
 0x23a   : > { %v5037_v25 = vcombine.low %v2583_v21, %v2587_v22  ;;  %v2433_v35 = vld [vmem:[#allocation8 + $0x258] sm:$0xff] }
 0x23b   : > { %4100 = vmatpush1.bf16.msra.mxu1 %v4973_v52  ;;  %v4921_v52 = vcombine.low %v2465_v24, %v2469_v5  ;;  %v2437_v43 = vld [vmem:[#allocation8 + $0x278] sm:$0xff]  ;;  %v4984_v5 = vcombine.high %v2528_v20, %v2532_v23 }
 0x23c   : > { %4259 = vmatpush1.bf16.msra.mxu0 %v4849_v63  ;;  %4101 = vmatprep.subr.bf16.mxu1 %v4966_v45  ;;  %v5038_v63 = vcombine.high %v2583_v21, %v2587_v22  ;;  %v4914_v45 = vcombine.high %v2457_v39, %v2461_v40  ;;  %v2425_v33 = vld [vmem:[#allocation8 + $0x218] sm:$0xff]  ;;  %v2512_v21 = vld [vmem:[#allocation8 + $0x4d0] sm:$0xff] }
 0x23d   : > { %4260 = vmatprep.subr.bf16.mxu0 %v4842_v31  ;;  %v2575_v31 = vld [vmem:[#allocation8 + $0x6c8] sm:$0xff]  ;;  %v2429_v37 = vld [vmem:[#allocation8 + $0x238] sm:$0xff]  ;;  %v2516_v22 = vld [vmem:[#allocation8 + $0x4f0] sm:$0xff] }
 0x23e   : > { %v5029_v1 = vcombine.low %v2575_v31, %v2579_v38  ;;  %v4881_v54 = vcombine.low %v2425_v33, %v2429_v37 }
 0x23f   : > { %4102 = vmatpush1.bf16.msra.mxu1 %v4965_v26  ;;  %v4913_v26 = vcombine.low %v2457_v39, %v2461_v40  ;;  %v2504_v39 = vld [vmem:[#allocation8 + $0x490] sm:$0xff] }
 0x240   : > { %4261 = vmatpush1.bf16.msra.mxu0 %v4841_v46  ;;  %4103 = vmatprep.subr.bf16.mxu1 %v4958_v61  ;;  %v5030_v46 = vcombine.high %v2575_v31, %v2579_v38  ;;  %v4906_v61 = vcombine.high %v2449_v59, %v2453_v60  ;;  %v2508_v40 = vld [vmem:[#allocation8 + $0x4b0] sm:$0xff] }
 0x241   : > { %4262 = vmatprep.subr.bf16.mxu0 %v4834_v41  ;;  %v2567_v41 = vld [vmem:[#allocation8 + $0x688] sm:$0xff]  ;;  %v4959_v31 = vcombine.low %v2504_v39, %v2508_v40 }
 0x242   : > { %v5021_v11 = vcombine.low %v2567_v41, %v2571_v58 }
 0x243   : > { %4104 = vmatpush1.bf16.msra.mxu1 %v4957_v27  ;;  %v4905_v27 = vcombine.low %v2449_v59, %v2453_v60  ;;  %v2488_v59 = vld [vmem:[#allocation8 + $0x410] sm:$0xff] }
 0x244   : > { %4263 = vmatpush1.bf16.msra.mxu0 %v4833_v3  ;;  %4105 = vmatprep.subr.bf16.mxu1 %v4950_v4  ;;  %v5022_v3 = vcombine.high %v2567_v41, %v2571_v58  ;;  %v4898_v4 = vcombine.high %v2441_v62, %v2445_v57  ;;  %v2600_v58 = vld [vmem:[#allocation8 + $0x790] sm:$0xff] }
 0x245   : > { %4264 = vmatprep.subr.bf16.mxu0 %v4826_v9  ;;  %v2559_v9 = vld [vmem:[#allocation8 + $0x648] sm:$0xff] }
 0x246   : > { %v5013_v10 = vcombine.low %v2559_v9, %v2563_v34 }
 0x247   : > { %4106 = vmatpush1.bf16.msra.mxu1 %v4949_v12  ;;  %v4897_v12 = vcombine.low %v2441_v62, %v2445_v57  ;;  %v2604_v62 = vld [vmem:[#allocation8 + $0x7b0] sm:$0xff] }
 0x248   : > { %4265 = vmatpush1.bf16.msra.mxu0 %v4825_v13  ;;  %4107 = vmatprep.subr.bf16.mxu1 %v4942_v49  ;;  %v5014_v13 = vcombine.high %v2559_v9, %v2563_v34  ;;  %v4890_v49 = vcombine.high %v2433_v35, %v2437_v43  ;;  %v2584_v34 = vld [vmem:[#allocation8 + $0x710] sm:$0xff] }
 0x249   : > { %4266 = vmatprep.subr.bf16.mxu0 %v4818_v15  ;;  %v2551_v15 = vld [vmem:[#allocation8 + $0x608] sm:$0xff] }
 0x24a   : > { %v5005_v48 = vcombine.low %v2551_v15, %v2555_v53 }
 0x24b   : > { %4108 = vmatpush1.bf16.msra.mxu1 %v4941_v16  ;;  %v4889_v16 = vcombine.low %v2433_v35, %v2437_v43  ;;  %v2588_v35 = vld [vmem:[#allocation8 + $0x730] sm:$0xff] }
 0x24c   : > { %4267 = vmatpush1.bf16.msra.mxu0 %v4817_v28  ;;  %4109 = vmatprep.subr.bf16.mxu1 %v5062_v2  ;;  %v5006_v28 = vcombine.high %v2551_v15, %v2555_v53  ;;  %v4882_v2 = vcombine.high %v2425_v33, %v2429_v37  ;;  %v2568_v53 = vld [vmem:[#allocation8 + $0x690] sm:$0xff] }
 0x24d   : > { %4268 = vmatprep.subr.bf16.mxu0 %v4938_v17  ;;  %v2544_v17 = vld [vmem:[#allocation8 + $0x5d0] sm:$0xff] }
 0x24e   : > { %v5000_v19 = vcombine.high %v2544_v17, %v2548_v18  ;;  %v2572_v33 = vld [vmem:[#allocation8 + $0x6b0] sm:$0xff] }
 0x24f   : > { %4110 = vmatpush2.bf16.msra.mxu1 %v5061_v32  ;;  %v2536_v32 = vld [vmem:[#allocation8 + $0x590] sm:$0xff] }
 0x250   : > { %4269 = vmatpush2.bf16.msra.mxu0 %v4937_v36  ;;  %4111 = vmatprep.subr.bf16.mxu1 %v5054_v51  ;;  %v2540_v36 = vld [vmem:[#allocation8 + $0x5b0] sm:$0xff]  ;;  %v4999_v51 = vcombine.low %v2544_v17, %v2548_v18 }
 0x251   : > { %4270 = vmatprep.subr.bf16.mxu0 %v4930_v14  ;;  %v4992_v14 = vcombine.high %v2536_v32, %v2540_v36  ;;  %v4991_v24 = vcombine.low %v2536_v32, %v2540_v36  ;;  %v2552_v18 = vld [vmem:[#allocation8 + $0x610] sm:$0xff]  ;;  %v2545_v32 = vld [vmem:[#allocation8 + $0x5d8] sm:$0xff] }
 0x252   : > { %v2549_v36 = vld [vmem:[#allocation8 + $0x5f8] sm:$0xff] }
 0x253   : > { %4112 = vmatpush2.bf16.msra.mxu1 %v5053_v8  ;;  %v2520_v8 = vld [vmem:[#allocation8 + $0x510] sm:$0xff] }
 0x254   : > { %4271 = vmatpush2.bf16.msra.mxu0 %v4929_v47  ;;  %4113 = vmatprep.subr.bf16.mxu1 %v5046_v0  ;;  %v2524_v47 = vld [vmem:[#allocation8 + $0x530] sm:$0xff]  ;;  %v4983_v0 = vcombine.low %v2528_v20, %v2532_v23  ;;  %v2537_v20 = vld [vmem:[#allocation8 + $0x598] sm:$0xff] }
 0x255   : > { %4272 = vmatprep.subr.bf16.mxu0 %v4922_v30  ;;  %v4976_v30 = vcombine.high %v2520_v8, %v2524_v47  ;;  %v2541_v23 = vld [vmem:[#allocation8 + $0x5b8] sm:$0xff] }
 0x257   : > { %4114 = vmatpush2.bf16.msra.mxu1 %v5045_v44  ;;  %v4967_v44 = vcombine.low %v2512_v21, %v2516_v22 }
 0x258   : > { %4273 = vmatpush2.bf16.msra.mxu0 %v4921_v52  ;;  %4115 = vmatprep.subr.bf16.mxu1 %v5038_v63  ;;  %v4960_v52 = vcombine.high %v2504_v39, %v2508_v40  ;;  %v2496_v63 = vld [vmem:[#allocation8 + $0x450] sm:$0xff]  ;;  %v2513_v39 = vld [vmem:[#allocation8 + $0x4d8] sm:$0xff] }
 0x259   : > { %4274 = vmatprep.subr.bf16.mxu0 %v4914_v45  ;;  %v2500_v45 = vld [vmem:[#allocation8 + $0x470] sm:$0xff]  ;;  %v2517_v40 = vld [vmem:[#allocation8 + $0x4f8] sm:$0xff] }
 0x25a   : > { %v4952_v38 = vcombine.high %v2496_v63, %v2500_v45  ;;  %v4951_v60 = vcombine.low %v2496_v63, %v2500_v45  ;;  %v2505_v63 = vld [vmem:[#allocation8 + $0x498] sm:$0xff] }
 0x25b   : > { %4116 = vmatpush2.bf16.msra.mxu1 %v5037_v25  ;;  %v2509_v45 = vld [vmem:[#allocation8 + $0x4b8] sm:$0xff] }
 0x25c   : > { %4275 = vmatpush2.bf16.msra.mxu0 %v4913_v26  ;;  %4117 = vmatprep.subr.bf16.mxu1 %v5030_v46  ;;  %v2608_v26 = vld [vmem:[#allocation8 + $0x7d0] sm:$0xff] }
 0x25d   : > { %4276 = vmatprep.subr.bf16.mxu0 %v4906_v61  ;;  %v2612_v46 = vld [vmem:[#allocation8 + $0x7f0] sm:$0xff] }
 0x25e   : > { %v5064_v41 = vcombine.high %v2608_v26, %v2612_v46  ;;  %v5063_v57 = vcombine.low %v2608_v26, %v2612_v46  ;;  %v2489_v26 = vld [vmem:[#allocation8 + $0x418] sm:$0xff] }
 0x25f   : > { %4118 = vmatpush2.bf16.msra.mxu1 %v5029_v1  ;;  %v5056_v1 = vcombine.high %v2600_v58, %v2604_v62  ;;  %v2493_v46 = vld [vmem:[#allocation8 + $0x438] sm:$0xff] }
 0x260   : > { %4277 = vmatpush2.bf16.msra.mxu0 %v4905_v27  ;;  %4119 = vmatprep.subr.bf16.mxu1 %v5022_v3  ;;  %v2592_v27 = vld [vmem:[#allocation8 + $0x750] sm:$0xff] }
 0x261   : > { %4278 = vmatprep.subr.bf16.mxu0 %v4898_v4  ;;  %v2596_v3 = vld [vmem:[#allocation8 + $0x770] sm:$0xff]  ;;  %v5055_v4 = vcombine.low %v2600_v58, %v2604_v62  ;;  %v2613_v58 = vld [vmem:[#allocation8 + $0x7f8] sm:$0xff]  ;;  %v4945_v62 = vcombine.low %v2489_v26, %v2493_v46 }
 0x262   : > { %v5048_v9 = vcombine.high %v2592_v27, %v2596_v3  ;;  %v5047_v43 = vcombine.low %v2592_v27, %v2596_v3  ;;  %v2605_v27 = vld [vmem:[#allocation8 + $0x7b8] sm:$0xff] }
 0x263   : > { %4120 = vmatpush2.bf16.msra.mxu1 %v5021_v11  ;;  %v5040_v11 = vcombine.high %v2584_v34, %v2588_v35 }
 0x264   : > { %4279 = vmatpush2.bf16.msra.mxu0 %v4897_v12  ;;  %4121 = vmatprep.subr.bf16.mxu1 %v5014_v13  ;;  %v2576_v12 = vld [vmem:[#allocation8 + $0x6d0] sm:$0xff] }
 0x265   : > { %4280 = vmatprep.subr.bf16.mxu0 %v4890_v49  ;;  %v2580_v13 = vld [vmem:[#allocation8 + $0x6f0] sm:$0xff]  ;;  %v5039_v49 = vcombine.low %v2584_v34, %v2588_v35  ;;  %v2597_v34 = vld [vmem:[#allocation8 + $0x778] sm:$0xff] }
 0x266   : > { %v5032_v15 = vcombine.high %v2576_v12, %v2580_v13  ;;  %v5031_v37 = vcombine.low %v2576_v12, %v2580_v13  ;;  %v2589_v12 = vld [vmem:[#allocation8 + $0x738] sm:$0xff] }
 0x267   : > { %4122 = vmatpush2.bf16.msra.mxu1 %v5013_v10  ;;  %v5024_v10 = vcombine.high %v2568_v53, %v2572_v33 }
 0x268   : > { %4281 = vmatpush2.bf16.msra.mxu0 %v4889_v16  ;;  %4123 = vmatprep.subr.bf16.mxu1 %v5006_v28  ;;  %v2560_v16 = vld [vmem:[#allocation8 + $0x650] sm:$0xff] }
 0x269   : > { %4282 = vmatprep.subr.bf16.mxu0 %v4882_v2  ;;  %v2564_v28 = vld [vmem:[#allocation8 + $0x670] sm:$0xff]  ;;  %v5023_v2 = vcombine.low %v2568_v53, %v2572_v33  ;;  %v2581_v53 = vld [vmem:[#allocation8 + $0x6f8] sm:$0xff] }
 0x26a   : > { %v5016_v17 = vcombine.high %v2560_v16, %v2564_v28 }
 0x26b   : > { %4124 = vmatpush2.bf16.msra.mxu1 %v5005_v48  ;;  %v2556_v48 = vld [vmem:[#allocation8 + $0x630] sm:$0xff] }
 0x26c   : > { %4283 = vmatpush2.bf16.msra.mxu0 %v4881_v54  ;;  %4199 = vmatprep.subr.bf16.mxu1 %v5000_v19  ;;  %v5015_v54 = vcombine.low %v2560_v16, %v2564_v28  ;;  %v5008_v19 = vcombine.high %v2552_v18, %v2556_v48  ;;  %v2573_v16 = vld [vmem:[#allocation8 + $0x6b8] sm:$0xff] }
 0x26e   : > { %4126 = vmatmul.mubr.bf16.vlgmr.msra.gmra.mxu1 %v6064_v55 }
 0x26f   : > { %4285 = vmatmul.mubr.bf16.vlgmr.msra.gmra.mxu0 %v6031_v56  ;;  %4135 = vmatprep.mubr.bf16.mxu1 %v6073_v29  ;;  %v4975_v56 = vcombine.low %v2520_v8, %v2524_v47  ;;  %v2529_v8 = vld [vmem:[#allocation8 + $0x558] sm:$0xff] }
 0x270   : > { %4200 = vmatpush1.bf16.msra.mxu1 %v4999_v51  ;;  %4294 = vmatprep.mubr.bf16.mxu0 %v6039_v7  ;;  %v4968_v7 = vcombine.high %v2512_v21, %v2516_v22  ;;  %v5007_v51 = vcombine.low %v2552_v18, %v2556_v48  ;;  %v2533_v47 = vld [vmem:[#allocation8 + $0x578] sm:$0xff]  ;;  %v3968_v48 = vpop.f32.mrf.mxu0 }
 0x271   : > { %4201 = vmatprep.subr.bf16.mxu1 %v4992_v14  ;;  %v5002_v14 = vcombine.high %v2545_v32, %v2549_v36  ;;  %v2521_v21 = vld [vmem:[#allocation8 + $0x518] sm:$0xff] }
 0x272   : > { %v2525_v22 = vld [vmem:[#allocation8 + $0x538] sm:$0xff] }
 0x273   : > { %v2565_v18 = vld [vmem:[#allocation8 + $0x678] sm:$0xff] }
 0x274   : > { %4202 = vmatpush1.bf16.msra.mxu1 %v4991_v24  ;;  %v5001_v24 = vcombine.low %v2545_v32, %v2549_v36  ;;  %v2553_v32 = vld [vmem:[#allocation8 + $0x618] sm:$0xff] }
 0x275   : > { %4203 = vmatprep.subr.bf16.mxu1 %v4984_v5  ;;  %v4994_v5 = vcombine.high %v2537_v20, %v2541_v23  ;;  %v2557_v36 = vld [vmem:[#allocation8 + $0x638] sm:$0xff] }
 0x276   : > { %4136 = vmatmul.mubr.bf16.gmra.mxu1 %v6075_v50 }
 0x277   : > { %4295 = vmatmul.mubr.bf16.gmra.mxu0 %v6041_v42  ;;  %4231 = vmatprep.mubr.bf16.mxu1 %v6060_v6  ;;  %v2492_v42 = vld [vmem:[#allocation8 + $0x430] sm:$0xff] }
 0x278   : > { %4204 = vmatpush1.bf16.msra.mxu1 %v4983_v0  ;;  %v4944_v25 = vcombine.high %v2488_v59, %v2492_v42  ;;  %v4943_v61 = vcombine.low %v2488_v59, %v2492_v42  ;;  %v4993_v0 = vcombine.low %v2537_v20, %v2541_v23  ;;  %v2497_v59 = vld [vmem:[#allocation8 + $0x458] sm:$0xff]  ;;  %v5010_v20 = vcombine.high %v2553_v32, %v2557_v36 }
 0x279   : > { %4205 = vmatprep.subr.bf16.mxu1 %v4976_v30  ;;  %v4986_v30 = vcombine.high %v2529_v8, %v2533_v47  ;;  %v2501_v42 = vld [vmem:[#allocation8 + $0x478] sm:$0xff] }
 0x27c   : > { %4206 = vmatpush1.bf16.msra.mxu1 %v4975_v56  ;;  %v4985_v56 = vcombine.low %v2529_v8, %v2533_v47 }
 0x27d   : > { %4207 = vmatprep.subr.bf16.mxu1 %v4968_v7  ;;  %v4978_v7 = vcombine.high %v2521_v21, %v2525_v22 }
 0x280   : > { %4208 = vmatpush1.bf16.msra.mxu1 %v4967_v44  ;;  %v4977_v44 = vcombine.low %v2521_v21, %v2525_v22 }
 0x281   : > { %4209 = vmatprep.subr.bf16.mxu1 %v4960_v52  ;;  %v4970_v52 = vcombine.high %v2513_v39, %v2517_v40 }
 0x284   : > { %4210 = vmatpush1.bf16.msra.mxu1 %v4959_v31  ;;  %v4969_v31 = vcombine.low %v2513_v39, %v2517_v40 }
 0x285   : > { %4211 = vmatprep.subr.bf16.mxu1 %v4952_v38  ;;  %v4962_v38 = vcombine.high %v2505_v63, %v2509_v45 }
 0x288   : > { %4212 = vmatpush1.bf16.msra.mxu1 %v4951_v60  ;;  %v4961_v60 = vcombine.low %v2505_v63, %v2509_v45 }
 0x289   : > { %4213 = vmatprep.subr.bf16.mxu1 %v4944_v25  ;;  %v4954_v25 = vcombine.high %v2497_v59, %v2501_v42 }
 0x28c   : > { %4214 = vmatpush1.bf16.msra.mxu1 %v4943_v61  ;;  %v4953_v61 = vcombine.low %v2497_v59, %v2501_v42 }
 0x28d   : > { %4215 = vmatprep.subr.bf16.mxu1 %v5064_v41  ;;  %v2609_v41 = vld [vmem:[#allocation8 + $0x7d8] sm:$0xff] }
 0x28e   : > { %v5065_v3 = vcombine.low %v2609_v41, %v2613_v58 }
 0x290   : > { %4216 = vmatpush2.bf16.msra.mxu1 %v5063_v57  ;;  %v5066_v57 = vcombine.high %v2609_v41, %v2613_v58 }
 0x291   : > { %4217 = vmatprep.subr.bf16.mxu1 %v5056_v1  ;;  %v2601_v1 = vld [vmem:[#allocation8 + $0x798] sm:$0xff] }
 0x292   : > { %v5057_v35 = vcombine.low %v2601_v1, %v2605_v27 }
 0x294   : > { %4218 = vmatpush2.bf16.msra.mxu1 %v5055_v4  ;;  %v5058_v4 = vcombine.high %v2601_v1, %v2605_v27 }
 0x295   : > { %4219 = vmatprep.subr.bf16.mxu1 %v5048_v9  ;;  %v2593_v9 = vld [vmem:[#allocation8 + $0x758] sm:$0xff] }
 0x296   : > { %v5049_v13 = vcombine.low %v2593_v9, %v2597_v34 }
 0x298   : > { %4220 = vmatpush2.bf16.msra.mxu1 %v5047_v43  ;;  %v5050_v43 = vcombine.high %v2593_v9, %v2597_v34 }
 0x299   : > { %4221 = vmatprep.subr.bf16.mxu1 %v5040_v11  ;;  %v2585_v11 = vld [vmem:[#allocation8 + $0x718] sm:$0xff] }
 0x29a   : > { %v5041_v33 = vcombine.low %v2585_v11, %v2589_v12 }
 0x29c   : > { %4222 = vmatpush2.bf16.msra.mxu1 %v5039_v49  ;;  %v5042_v49 = vcombine.high %v2585_v11, %v2589_v12 }
 0x29d   : > { %4223 = vmatprep.subr.bf16.mxu1 %v5032_v15  ;;  %v2577_v15 = vld [vmem:[#allocation8 + $0x6d8] sm:$0xff] }
 0x29e   : > { %v5033_v28 = vcombine.low %v2577_v15, %v2581_v53 }
 0x2a0   : > { %4224 = vmatpush2.bf16.msra.mxu1 %v5031_v37  ;;  %v5034_v37 = vcombine.high %v2577_v15, %v2581_v53 }
 0x2a1   : > { %4225 = vmatprep.subr.bf16.mxu1 %v5024_v10  ;;  %v2569_v10 = vld [vmem:[#allocation8 + $0x698] sm:$0xff] }
 0x2a4   : > { %4226 = vmatpush2.bf16.msra.mxu1 %v5023_v2  ;;  %v5026_v2 = vcombine.high %v2569_v10, %v2573_v16 }
 0x2a5   : > { %4227 = vmatprep.subr.bf16.mxu1 %v5016_v17  ;;  %v2561_v17 = vld [vmem:[#allocation8 + $0x658] sm:$0xff] }
 0x2a8   : > { %4228 = vmatpush2.bf16.msra.mxu1 %v5015_v54  ;;  %v5025_v54 = vcombine.low %v2569_v10, %v2573_v16 }
 0x2a9   : > { %4229 = vmatprep.subr.bf16.mxu1 %v5008_v19  ;;  %v5018_v19 = vcombine.high %v2561_v17, %v2565_v18 }
 0x2ac   : > { %4230 = vmatpush2.bf16.msra.mxu1 %v5007_v51  ;;  %v3970_v51 = vpop.f32.mrf.mxu0 }
 0x2ad   : > { %4305 = vmatprep.subr.bf16.mxu1 %v5002_v14  ;;  %v5017_v14 = vcombine.low %v2561_v17, %v2565_v18 }
 0x2ae   : > { %v3972_v23 = vpop.f32.mrf.mxu0 }
 0x2af   : > { %4232 = vmatmul.mubr.bf16.vlgmr.msra.gmra.mxu1 %v6064_v55 }
 0x2b0   : > { %4241 = vmatprep.mubr.bf16.mxu1 %v6073_v29  ;;  %4306 = vmatpush1.bf16.msra.mxu1 %v5001_v24  ;;  %v5009_v24 = vcombine.low %v2553_v32, %v2557_v36 }
 0x2b1   : > { %4307 = vmatprep.subr.bf16.mxu1 %v4994_v5  ;;  %v3974_v5 = vpop.f32.mrf.mxu0 }
 0x2b4   : > { %4308 = vmatpush1.bf16.msra.mxu1 %v4993_v0  ;;  %v3978_v0 = vpop.f32.mrf.mxu0 }
 0x2b5   : > { %4309 = vmatprep.subr.bf16.mxu1 %v4986_v30 }
 0x2b7   : > { %4242 = vmatmul.mubr.bf16.gmra.mxu1 %v6075_v50 }
 0x2b8   : > { %4310 = vmatpush1.bf16.msra.mxu1 %v4985_v56  ;;  %4337 = vmatprep.mubr.bf16.mxu1 %v6060_v6  ;;  %v4946_v6 = vcombine.high %v2489_v26, %v2493_v46 }
 0x2b9   : > { %4311 = vmatprep.subr.bf16.mxu1 %v4978_v7  ;;  %v3980_v7 = vpop.f32.mrf.mxu0 }
 0x2bc   : > { %4312 = vmatpush1.bf16.msra.mxu1 %v4977_v44  ;;  %v3982_v44 = vpop.f32.mrf.mxu0 }
 0x2bd   : > { %4313 = vmatprep.subr.bf16.mxu1 %v4970_v52 }
 0x2c0   : > { %4314 = vmatpush1.bf16.msra.mxu1 %v4969_v31 }
 0x2c1   : > { %4315 = vmatprep.subr.bf16.mxu1 %v4962_v38  ;;  %v3984_v38 = vpop.f32.mrf.mxu0 }
 0x2c4   : > { %4316 = vmatpush1.bf16.msra.mxu1 %v4961_v60  ;;  %v4074_v60 = vpop.f32.mrf.mxu0 }
 0x2c5   : > { %4317 = vmatprep.subr.bf16.mxu1 %v4954_v25 }
 0x2c6   : > { %v4076_v25 = vpop.f32.mrf.mxu0 }
 0x2c8   : > { %4318 = vmatpush1.bf16.msra.mxu1 %v4953_v61  ;;  %v4078_v26 = vpop.f32.mrf.mxu0 }
 0x2c9   : > { %4319 = vmatprep.subr.bf16.mxu1 %v4946_v6 }
 0x2cc   : > { %4320 = vmatpush1.bf16.msra.mxu1 %v4945_v62 }
 0x2cd   : > { %4321 = vmatprep.subr.bf16.mxu1 %v5066_v57 }
 0x2d0   : > { %4322 = vmatpush2.bf16.msra.mxu1 %v5065_v3 }
 0x2d1   : > { %4323 = vmatprep.subr.bf16.mxu1 %v5058_v4 }
 0x2d4   : > { %4324 = vmatpush2.bf16.msra.mxu1 %v5057_v35 }
 0x2d5   : > { %4325 = vmatprep.subr.bf16.mxu1 %v5050_v43 }
 0x2d8   : > { %4326 = vmatpush2.bf16.msra.mxu1 %v5049_v13 }
 0x2d9   : > { %4327 = vmatprep.subr.bf16.mxu1 %v5042_v49 }
 0x2dc   : > { %4328 = vmatpush2.bf16.msra.mxu1 %v5041_v33 }
 0x2dd   : > { %4329 = vmatprep.subr.bf16.mxu1 %v5034_v37 }
 0x2e0   : > { %4330 = vmatpush2.bf16.msra.mxu1 %v5033_v28 }
 0x2e1   : > { %4331 = vmatprep.subr.bf16.mxu1 %v5026_v2 }
 0x2e4   : > { %4332 = vmatpush2.bf16.msra.mxu1 %v5025_v54 }
 0x2e5   : > { %4333 = vmatprep.subr.bf16.mxu1 %v5018_v19 }
 0x2e8   : > { %4334 = vmatpush2.bf16.msra.mxu1 %v5017_v14 }
 0x2e9   : > { %4335 = vmatprep.subr.bf16.mxu1 %v5010_v20 }
 0x2ec   : > { %4336 = vmatpush2.bf16.msra.mxu1 %v5009_v24 }
 0x2ee   : > { %v4021_v8 = vpop.f32.mrf.mxu1 }
 0x2ef   : > { %4338 = vmatmul.mubr.bf16.vlgmr.msra.gmra.mxu1 %v6064_v55  ;;  %v4022_v47 = vadd.f32 %v4021_v8, %v3968_v48 }
 0x2f0   : > { %4347 = vmatprep.mubr.bf16.mxu1 %v6073_v29  ;;  %v4023_v30 = vpop.f32.mrf.mxu1 }
 0x2f1   : > { %4358 = vst [vmem:[%s6096_s26] sm:$0xff] %v4022_v47  ;;  %v4024_v21 = vadd.f32 %v4023_v30, %v3970_v51 }
 0x2f2   : > { %v4025_v22 = vpop.f32.mrf.mxu1 }
 0x2f3   : > { %4359 = vst [vmem:[%s6096_s26 + $0x8] sm:$0xff] %v4024_v21  ;;  %v4026_v56 = vadd.f32 %v4025_v22, %v3972_v23 }
 0x2f4   : > { %v4027_v55 = vpop.f32.mrf.mxu1 }
 0x2f5   : > { %4366 = vst [vmem:[%s6096_s26 + $0x40] sm:$0xff] %v4026_v56  ;;  %v4028_v39 = vadd.f32 %v4027_v55, %v3974_v5 }
 0x2f6   : > { %v4031_v29 = vpop.f32.mrf.mxu1 }
 0x2f7   : > { %4367 = vst [vmem:[%s6096_s26 + $0x48] sm:$0xff] %v4028_v39  ;;  %4348 = vmatmul.mubr.bf16.gmra.mxu1 %v6075_v50  ;;  %v4032_v40 = vadd.f32 %v4031_v29, %v3978_v0  ;;  %v4080_v50 = vpop.f32.mrf.mxu0 }
 0x2f8   : > { %v4033_v52 = vpop.f32.mrf.mxu1 }
 0x2f9   : > { %4374 = vst [vmem:[%s6096_s26 + $0x80] sm:$0xff] %v4032_v40  ;;  %v4034_v63 = vadd.f32 %v4033_v52, %v3980_v7  ;;  %v4084_v6 = vpop.f32.mrf.mxu0 }
 0x2fa   : > { %v4035_v45 = vpop.f32.mrf.mxu1 }
 0x2fb   : > { %4375 = vst [vmem:[%s6096_s26 + $0x88] sm:$0xff] %v4034_v63  ;;  %v4036_v31 = vadd.f32 %v4035_v45, %v3982_v44  ;;  %v4086_v1 = vpop.f32.mrf.mxu0 }
 0x2fc   : > { %v4037_v59 = vpop.f32.mrf.mxu1 }
 0x2fd   : > { %4382 = vst [vmem:[%s6096_s26 + $0xc0] sm:$0xff] %v4036_v31  ;;  %v4038_v42 = vadd.f32 %v4037_v59, %v3984_v38  ;;  %v4088_v34 = vpop.f32.mrf.mxu0 }
 0x2ff   : > { %4383 = vst [vmem:[%s6096_s26 + $0xc8] sm:$0xff] %v4038_v42  ;;  %v4090_v13 = vpop.f32.mrf.mxu0 }
 0x301   : > { %v4180_v53 = vpop.f32.mrf.mxu0 }
 0x303   : > { %v4182_v33 = vpop.f32.mrf.mxu0 }
 0x305   : > { %v4184_v37 = vpop.f32.mrf.mxu0 }
 0x307   : > { %v4186_v10 = vpop.f32.mrf.mxu0 }
 0x309   : > { %v4190_v2 = vpop.f32.mrf.mxu0 }
 0x30b   : > { %v4192_v19 = vpop.f32.mrf.mxu0 }
 0x30d   : > { %v4194_v20 = vpop.f32.mrf.mxu0 }
 0x30f   : > { %v4196_v47 = vpop.f32.mrf.mxu0 }
 0x32e   : > { %v4127_v46 = vpop.f32.mrf.mxu1 }
 0x32f   : > { %v4128_v61 = vadd.f32 %v4127_v46, %v4074_v60  ;;  %v4286_v21 = vpop.f32.mrf.mxu0 }
 0x330   : > { %v4129_v41 = vpop.f32.mrf.mxu1 }
 0x331   : > { %4360 = vst [vmem:[%s6096_s26 + $0x10] sm:$0xff] %v4128_v61  ;;  %v4130_v58 = vadd.f32 %v4129_v41, %v4076_v25  ;;  %v4288_v22 = vpop.f32.mrf.mxu0 }
 0x332   : > { %v4131_v62 = vpop.f32.mrf.mxu1 }
 0x333   : > { %4361 = vst [vmem:[%s6096_s26 + $0x18] sm:$0xff] %v4130_v58  ;;  %v4132_v57 = vadd.f32 %v4131_v62, %v4078_v26  ;;  %v4290_v56 = vpop.f32.mrf.mxu0 }
 0x334   : > { %v4133_v27 = vpop.f32.mrf.mxu1 }
 0x335   : > { %4368 = vst [vmem:[%s6096_s26 + $0x50] sm:$0xff] %v4132_v57  ;;  %v4134_v3 = vadd.f32 %v4133_v27, %v4080_v50  ;;  %v4292_v7 = vpop.f32.mrf.mxu0 }
 0x336   : > { %v4137_v4 = vpop.f32.mrf.mxu1 }
 0x337   : > { %4369 = vst [vmem:[%s6096_s26 + $0x58] sm:$0xff] %v4134_v3  ;;  %v4138_v9 = vadd.f32 %v4137_v4, %v4084_v6  ;;  %v4296_v29 = vpop.f32.mrf.mxu0 }
 0x338   : > { %v4139_v35 = vpop.f32.mrf.mxu1 }
 0x339   : > { %4376 = vst [vmem:[%s6096_s26 + $0x90] sm:$0xff] %v4138_v9  ;;  %v4140_v43 = vadd.f32 %v4139_v35, %v4086_v1  ;;  %v4298_v45 = vpop.f32.mrf.mxu0 }
 0x33a   : > { %v4141_v11 = vpop.f32.mrf.mxu1 }
 0x33b   : > { %4377 = vst [vmem:[%s6096_s26 + $0x98] sm:$0xff] %v4140_v43  ;;  %v4142_v12 = vadd.f32 %v4141_v11, %v4088_v34  ;;  %v4300_v60 = vpop.f32.mrf.mxu0 }
 0x33c   : > { %v4143_v49 = vpop.f32.mrf.mxu1 }
 0x33d   : > { %4384 = vst [vmem:[%s6096_s26 + $0xd0] sm:$0xff] %v4142_v12  ;;  %v4144_v15 = vadd.f32 %v4143_v49, %v4090_v13  ;;  %v4302_v61 = vpop.f32.mrf.mxu0 }
 0x33f   : > { %4385 = vst [vmem:[%s6096_s26 + $0xd8] sm:$0xff] %v4144_v15 }
 0x36f   : > { %v4233_v16 = vpop.f32.mrf.mxu1 }
 0x370   : > { %v4234_v28 = vadd.f32 %v4233_v16, %v4180_v53 }
 0x371   : > { %v4235_v17 = vpop.f32.mrf.mxu1 }
 0x372   : > { %4362 = vst [vmem:[%s6096_s26 + $0x20] sm:$0xff] %v4234_v28  ;;  %v4236_v18 = vadd.f32 %v4235_v17, %v4182_v33 }
 0x373   : > { %v4237_v48 = vpop.f32.mrf.mxu1 }
 0x374   : > { %4363 = vst [vmem:[%s6096_s26 + $0x28] sm:$0xff] %v4236_v18  ;;  %v4238_v54 = vadd.f32 %v4237_v48, %v4184_v37 }
 0x375   : > { %v4239_v32 = vpop.f32.mrf.mxu1 }
 0x376   : > { %4370 = vst [vmem:[%s6096_s26 + $0x60] sm:$0xff] %v4238_v54  ;;  %v4240_v36 = vadd.f32 %v4239_v32, %v4186_v10 }
 0x377   : > { %v4243_v51 = vpop.f32.mrf.mxu1 }
 0x378   : > { %4371 = vst [vmem:[%s6096_s26 + $0x68] sm:$0xff] %v4240_v36  ;;  %v4244_v14 = vadd.f32 %v4243_v51, %v4190_v2 }
 0x379   : > { %v4245_v23 = vpop.f32.mrf.mxu1 }
 0x37a   : > { %4378 = vst [vmem:[%s6096_s26 + $0xa0] sm:$0xff] %v4244_v14  ;;  %v4246_v24 = vadd.f32 %v4245_v23, %v4192_v19 }
 0x37b   : > { %v4247_v5 = vpop.f32.mrf.mxu1 }
 0x37c   : > { %4379 = vst [vmem:[%s6096_s26 + $0xa8] sm:$0xff] %v4246_v24  ;;  %v4248_v8 = vadd.f32 %v4247_v5, %v4194_v20 }
 0x37d   : > { %v4249_v0 = vpop.f32.mrf.mxu1 }
 0x37e   : > { %4386 = vst [vmem:[%s6096_s26 + $0xe0] sm:$0xff] %v4248_v8  ;;  %v4250_v30 = vadd.f32 %v4249_v0, %v4196_v47 }
 0x380   : > { %4387 = vst [vmem:[%s6096_s26 + $0xe8] sm:$0xff] %v4250_v30 }
 0x3af   : > { %v4339_v55 = vpop.f32.mrf.mxu1 }
 0x3b0   : > { %v4340_v39 = vadd.f32 %v4339_v55, %v4286_v21 }
 0x3b1   : > { %v4341_v40 = vpop.f32.mrf.mxu1 }
 0x3b2   : > { %4364 = vst [vmem:[%s6096_s26 + $0x30] sm:$0xff] %v4340_v39  ;;  %v4342_v44 = vadd.f32 %v4341_v40, %v4288_v22 }
 0x3b3   : > { %v4343_v52 = vpop.f32.mrf.mxu1 }
 0x3b4   : > { %4365 = vst [vmem:[%s6096_s26 + $0x38] sm:$0xff] %v4342_v44  ;;  %v4344_v63 = vadd.f32 %v4343_v52, %v4290_v56 }
 0x3b5   : > { %v4345_v31 = vpop.f32.mrf.mxu1 }
 0x3b6   : > { %4372 = vst [vmem:[%s6096_s26 + $0x70] sm:$0xff] %v4344_v63  ;;  %v4346_v38 = vadd.f32 %v4345_v31, %v4292_v7 }
 0x3b7   : > { %v4349_v59 = vpop.f32.mrf.mxu1 }
 0x3b8   : > { %4373 = vst [vmem:[%s6096_s26 + $0x78] sm:$0xff] %v4346_v38  ;;  %v4350_v42 = vadd.f32 %v4349_v59, %v4296_v29 }
 0x3b9   : > { %v4351_v25 = vpop.f32.mrf.mxu1 }
 0x3ba   : > { %4380 = vst [vmem:[%s6096_s26 + $0xb0] sm:$0xff] %v4350_v42  ;;  %v4352_v26 = vadd.f32 %v4351_v25, %v4298_v45 }
 0x3bb   : > { %v4353_v50 = vpop.f32.mrf.mxu1 }
 0x3bc   : > { %4381 = vst [vmem:[%s6096_s26 + $0xb8] sm:$0xff] %v4352_v26  ;;  %v4354_v46 = vadd.f32 %v4353_v50, %v4300_v60  ;;  %4397 = sbr.rel (!%p6208_p10) target bundleno = 988 (0x3dc), region = 48 }
 0x3bd   : > { %v4355_v6 = vpop.f32.mrf.mxu1 }
 0x3be   : > { %4388 = vst [vmem:[%s6096_s26 + $0xf0] sm:$0xff] %v4354_v46  ;;  %v4356_v41 = vadd.f32 %v4355_v6, %v4302_v61 }
 0x3c0   : > { %4389 = vst [vmem:[%s6096_s26 + $0xf8] sm:$0xff] %v4356_v41 }
 0x3c1   : > { %s6217_s10 = smov (!%p4400_p1, %s4399_s10), 4 }
 0x3c2   : > { %s6135_s11 = sshll.u32 %s6217_s10, 10 }
 0x3c3   : > { %s4405_s28 = ssub.s32 4096, %s6135_s11 }
 0x3c4   : > { %4406 = vsyncadd %s4391_s29, %s4405_s28  ;;  %p5071_p3 = scmp.ne.s32.totalorder %s6135_s11, 0  ;;  %s5091_s24 = sshll.u32 %s5753_s16, 12 }
 0x3c5   : > { %s6145_s4 = scalar_lea.hbm %s6196_s3, %s5091_s24  ;;  %s4412_s7 = sshll.u32 %s6096_s26, 4  ;;  %s6148_s7 = int_to_ptr.vmem [resolvable:$true] %s4412_s7 }
 0x3c6   : > { %s5630_s22 = scalar_lea.vmem %s6148_s7, %s6135_s11  ;;  %s5709_s8 = smov [#allocation9]  }
 0x3c7   : > { %p5631_p7 = scmp.ne.s32.totalorder %s6148_s7, %s5630_s22  ;;  %s5634_s9 = sshll.u32 %s5709_s8, 4  ;;  %s5635_s9 = int_to_ptr.vmem [resolvable:$false] %s5634_s9 }
 0x3c8   : > { %s5636_s16 = scalar_lea.vmem %s5635_s9, 8192  ;;  %p5637_p4 = scmp.lt.s32.totalorder %s6148_s7, %s5635_s9 }
 0x3c9   : > { %p5632_p9 = pnand %p5631_p7, %p5071_p3  ;;  %p5638_p6 = scmp.lt.s32.totalorder %s5636_s16, %s5630_s22 }
 0x3cb   : > { %p5633_p12 = pneg %p5632_p9  ;;  %p5639_p11 = por %p5638_p6, %p5637_p4 }
 0x3cd   : > { %p5640_p0 = pnand %p5639_p11, %p5633_p12 }
 0x3cf   : > { %5643 = shalt.err (!%p5640_p0)
}
 0x3d0   : > { %s5644_s19 = scalar_lea.hbm %s6145_s4, %s6135_s11  ;;  %s5648_s23 = scalar_lea.hbm %s6196_s3, 7168 }
 0x3d1   : > { %p5645_p2 = scmp.ne.s32.totalorder %s6145_s4, %s5644_s19  ;;  %p5649_p10 = scmp.lt.s32.totalorder %s6145_s4, %s6196_s3 }
 0x3d2   : > { %p5650_p1 = scmp.lt.s32.totalorder %s5648_s23, %s5644_s19 }
 0x3d3   : > { %p5646_p5 = pnand %p5645_p2, %p5071_p3 }
 0x3d4   : > { %p5651_p7 = por %p5650_p1, %p5649_p10 }
 0x3d5   : > { %p5647_p13 = pneg %p5646_p5 }
 0x3d7   : > { %p5652_p9 = pnand %p5651_p7, %p5647_p13 }
 0x3d9   : > { %5655 = shalt.err (!%p5652_p9)
}
 0x3da   : > { %s5710_s10 = smov 1024   ;;  %s5711_s28 = smov 64  }
 0x3db   : > { %4418 = dma.vmem_to_hbm [thread:$0]  (%p5071_p3), %s6148_s7, %s6135_s11, %s6145_s4, %s4391_s29, %s5710_s10, %s5710_s10, %s5711_s28  }
 0x3dc PF: > { %s4427_s24 = sand.u32 1, %s5686_s12   ;;  %p6209_p12 = scmp.ne.s32.totalorder %s6202_s25, 0 }
 0x3dd   : > { %s4428_s30 = scalar_lea.sflag [#allocation5], %s4427_s24 }
 0x3de   : > { %p5118_p4 = pnand %p4508_p8, %p6209_p12 }
 0x3e0   : > { %p5119_p6 = pneg %p5118_p4 }
 0x3e2   : > { %5681 = dma.done.wait (%p5119_p6), %s4428_s30, 4096  }
 0x3e3   : > { %5683 = vsyncadd (%p5119_p6), %s4428_s30, 4294963200  ;;  %p17_p11 = scmp.ge.s32.totalorder %s5757_s18, 4   ;;  %s6210_s12 = smov %s5690_s13 }
 0x3e4   : > { %s6211_s13 = smov %s5694_s14  ;;  %s6212_s14 = smov %s5769_s21 }
 0x3e5   : > { %s6213_s15 = smov %s5757_s18  ;;  %19 = sbr.rel (!%p17_p11) target bundleno = 6 (0x6), region = 85 }
 0x3ea   :  { %4433 = vsyncpa [#allocation4], 1 }
 0x3eb   :  { %4435 = vsyncpa [#allocation4 + $0x1], 1 }
 0x3ec   :  { %4436 = vsyncpa [#allocation7], 1 }
 0x3ed   :  { %4437 = vsyncpa [#allocation5], 1 }
 0x3ee   :  { %4439 = vsyncpa [#allocation5 + $0x1], 1 }

</bundles_post_ra>
